<compile_context>
chip_gen: v5e
topology: v5e:2x2
jax: 0.10.0
libtpu: 0.0.40
codegen_flags: <defaults>
</compile_context>

<pallas_src>
import functools

import jax
import jax.numpy as jnp
from jax import lax
from jax.experimental import pallas as pl
from jax.experimental.pallas import tpu as pltpu


def _dwconv_kernel(x_ref, w_ref, o_ref, xp_ref, *, k, d, stride, pad,
                   H, W, Wo, Ht_blk, Hs, n_strips, Hp_s, Wp):
    """One grid step: (batch n, channel tile c, output-row tile h).

    x_ref : (1, H, W, Ct)        unpadded NHWC input tile (lanes = C)
    w_ref : (k*k, Ct)            per-channel taps (lanes = C)
    o_ref : (1, Ht_blk, Wo, Ct)  output row-tile (lanes = C)
    xp_ref: (Hp_s, Wp, Ct)       VMEM scratch with the zero-padded image; filled
                                 once per (n, c) at h == 0, reused for h > 0.
    """
    Ct = xp_ref.shape[-1]
    h_idx = pl.program_id(2)

    # ---- Fill the padded scratch once per (n, c) tile.  Only the thin halo
    # ---- strips are zeroed; the interior copy is lane-dense (no lane rotation).
    @pl.when(h_idx == 0)
    def _fill():
        zdt = xp_ref.dtype
        if pad > 0:
            xp_ref[0:pad, :, :] = jnp.zeros((pad, Wp, Ct), zdt)                # top
            xp_ref[pad:pad + H, 0:pad, :] = jnp.zeros((H, pad, Ct), zdt)       # left
            xp_ref[pad:pad + H, pad + W:Wp, :] = jnp.zeros((H, pad, Ct), zdt)  # right
        if Hp_s > pad + H:
            # bottom halo plus the masked overshoot rows of the last row-tile.
            xp_ref[pad + H:Hp_s, :, :] = jnp.zeros((Hp_s - pad - H, Wp, Ct), zdt)
        # TODO(synk): this interior copy could run on the DMA engine via
        # pltpu.make_async_copy(x_ref.at[0], xp_ref.at[...]) to free vector slots.
        xp_ref[pad:pad + H, pad:pad + W, :] = x_ref[0]

    w = w_ref[...].astype(jnp.float32)           # (k*k, Ct), hoisted single load

    def compute_strip(orow):
        # orow: first output row of this strip, relative to the current o_ref block.
        base = (h_idx * Ht_blk + orow) * stride  # matching row in the padded scratch
        acc = jnp.zeros((Hs, Wo, Ct), jnp.float32)
        for kh in range(k):
            for kw in range(k):
                if stride == 1:
                    win = xp_ref[pl.ds(base + kh * d, Hs), kw * d:kw * d + Wo, :]
                else:
                    # TODO(synk): a space-to-depth phase split would make these
                    # loads unit-stride; strided slices are correct but slower.
                    win = xp_ref[pl.ds(base + kh * d, Hs, stride=stride),
                                 pl.ds(kw * d, Wo, stride=stride), :]
                # (Ct,) tap broadcasts along lanes only -> plain VPU multiply-add.
                acc = acc + win.astype(jnp.float32) * w[kh * k + kw, :]
        o_ref[0, pl.ds(orow, Hs), :, :] = acc.astype(o_ref.dtype)

    if n_strips == 1:
        compute_strip(0)
    else:
        def body(s, carry):
            compute_strip(s * Hs)
            return carry
        lax.fori_loop(0, n_strips, body, 0)


def channel_wise_dilated_conv_nhwc(x_nhwc, w_taps, *, kSize, stride=1, d=1):
    """Depthwise dilated conv, channels-last. x: (N,H,W,C), w_taps: (k*k, C)."""
    N, H, W, C = x_nhwc.shape
    k = kSize
    pad = ((k - 1) // 2) * d
    Ho = (H + 2 * pad - d * (k - 1) - 1) // stride + 1
    Wo = (W + 2 * pad - d * (k - 1) - 1) // stride + 1

    # Channel tile: 128 lanes when possible (lane-dense stores), else full C.
    Ct = 128 if (C % 128 == 0) else C
    n_ct = C // Ct

    # Output-row tiling: keep the f32 accumulator strip within the vreg file
    # (~<=160 KiB) and the per-grid-step output block around 1-2 MiB.
    itemsize = jnp.dtype(x_nhwc.dtype).itemsize
    row_bytes_acc = Wo * Ct * 4
    Hs = max(1, min(Ho, (160 * 1024) // row_bytes_acc))
    spb = max(1, min(Ho // Hs, (2 * 1024 * 1024) // max(1, Hs * row_bytes_acc)))
    Ht_blk = Hs * spb
    n_strips = spb
    n_h = pl.cdiv(Ho, Ht_blk)

    # Padded-scratch extents; tall enough that the masked overshoot rows of the
    # last row-tile still read initialized (zero) data.
    Wp = W + 2 * pad
    Hp_s = max(H + 2 * pad, (n_h * Ht_blk - 1) * stride + (k - 1) * d + 1)

    kernel = functools.partial(
        _dwconv_kernel, k=k, d=d, stride=stride, pad=pad,
        H=H, W=W, Wo=Wo, Ht_blk=Ht_blk, Hs=Hs, n_strips=n_strips,
        Hp_s=Hp_s, Wp=Wp)

    # VMEM budget: 2x double-buffered input + 2x output + scratch + weights.
    in_blk = H * W * Ct * itemsize
    out_blk = Ht_blk * Wo * Ct * itemsize
    scr_blk = Hp_s * Wp * Ct * itemsize
    w_blk = k * k * Ct * jnp.dtype(w_taps.dtype).itemsize
    est = 2 * in_blk + 2 * out_blk + scr_blk + 2 * w_blk
    vmem_limit = int(min(56 << 20, max(24 << 20, est + (2 << 20))))
    # TODO(synk): for very large H*W*Ct tiles (v7x: 64 MiB physical VMEM), add a
    # halo-overlapped H tile at the grid level instead of the full image per step.

    return pl.pallas_call(
        kernel,
        out_shape=jax.ShapeDtypeStruct((N, Ho, Wo, C), x_nhwc.dtype),
        grid_spec=pltpu.PrefetchScalarGridSpec(
            num_scalar_prefetch=0,
            grid=(N, n_ct, n_h),      # h innermost -> padded scratch reused per (n, c)
            in_specs=[
                pl.BlockSpec((1, H, W, Ct), lambda n, c, h: (n, 0, 0, c)),
                pl.BlockSpec((k * k, Ct), lambda n, c, h: (0, c)),
            ],
            out_specs=pl.BlockSpec((1, Ht_blk, Wo, Ct), lambda n, c, h: (n, h, 0, c)),
            scratch_shapes=[pltpu.VMEM((Hp_s, Wp, Ct), x_nhwc.dtype)],
        ),
        compiler_params=pltpu.CompilerParams(
            dimension_semantics=("parallel", "parallel", "arbitrary"),
            vmem_limit_bytes=vmem_limit,
        ),
    )(x_nhwc, w_taps)


def channel_wise_dilated_conv(x_nchw, weight, *, kSize, stride=1, d=1):
    """PyTorch-layout wrapper matching
    nn.Conv2d(nIn, nIn, kSize, stride, padding=((kSize-1)//2)*d, groups=nIn,
              bias=False, dilation=d).

    x_nchw: (N, C, H, W); weight: (C, 1, kSize, kSize).  Returns (N, C, Ho, Wo).
    The transposes below are API glue for the PyTorch layout; NHWC pipelines
    should call channel_wise_dilated_conv_nhwc directly and skip them.
    """
    C = x_nchw.shape[1]
    x_nhwc = jnp.transpose(x_nchw, (0, 2, 3, 1))
    w_taps = jnp.transpose(weight.reshape(C, kSize * kSize), (1, 0))  # (k*k, C)
    out_nhwc = channel_wise_dilated_conv_nhwc(
        x_nhwc, w_taps, kSize=kSize, stride=stride, d=d)
    return jnp.transpose(out_nhwc, (0, 3, 1, 2))


if __name__ == "__main__":
    # Small shapes consistent with the module: N=2, C=4 (nIn == nOut), 16x16, k=3.
    N, C, H, W = 2, 4, 16, 16
    kSize, stride = 3, 1

    key = jax.random.PRNGKey(0)
    kx, kw = jax.random.split(key)
    x = jax.random.normal(kx, (N, C, H, W), dtype=jnp.float32)

    for dil in (1, 2):  # exercise the dilation path of ChannelWiseDilatedConv
        wkey = jax.random.fold_in(kw, dil)
        weight = jax.random.normal(wkey, (C, 1, kSize, kSize), dtype=jnp.float32) * 0.1

        out = channel_wise_dilated_conv(x, weight, kSize=kSize, stride=stride, d=dil)
        out = jax.block_until_ready(out)

        pad = ((kSize - 1) // 2) * dil
        ref = lax.conv_general_dilated(
            x, weight,
            window_strides=(stride, stride),
            padding=[(pad, pad), (pad, pad)],
            rhs_dilation=(dil, dil),
            dimension_numbers=("NCHW", "OIHW", "NCHW"),
            feature_group_count=C,
        )
        assert out.shape == ref.shape, (out.shape, ref.shape)
        assert jnp.max(jnp.abs(out - ref)) < 1e-4

    print("KERNEL_OK")
</pallas_src>

<mosaic_0001>
module attributes {stable_mosaic.version = 11 : i64} {
  func.func @_dwconv_kernel(%arg0: i32, %arg1: i32, %arg2: i32, %arg3: memref<1x16x16x4xf32, #tpu.memory_space<vmem>>, %arg4: memref<9x4xf32, #tpu.memory_space<vmem>>, %arg5: memref<1x16x16x4xf32, #tpu.memory_space<vmem>>, %arg6: memref<18x18x4xf32, #tpu.memory_space<vmem>>) attributes {dimension_semantics = [#tpu.dimension_semantics<parallel>, #tpu.dimension_semantics<parallel>, #tpu.dimension_semantics<arbitrary>], iteration_bounds = array<i64: 2, 1, 1>, scalar_prefetch = 0 : i64, scratch_operands = 1 : i64, tpu.core_type = #tpu.core_type<tc>, window_params = [{transform_indices = @transform_0, window_bounds = array<i64: 1, 16, 16, 4>}, {transform_indices = @transform_1, window_bounds = array<i64: 9, 4>}, {transform_indices = @transform_2, window_bounds = array<i64: 1, 16, 16, 4>}]} {
    %c0_i32 = arith.constant 0 : i32
    %0 = arith.cmpi eq, %arg2, %c0_i32 : i32
    %1 = arith.extui %0 : i1 to i32
    %c0_i32_0 = arith.constant 0 : i32
    %2 = arith.cmpi ne, %1, %c0_i32_0 : i32
    scf.if %2 {
      %cst_31 = arith.constant 0.000000e+00 : f32
      %92 = vector.broadcast %cst_31 : f32 to vector<1x18x4xf32>
      %c0_32 = arith.constant 0 : index
      %c0_33 = arith.constant 0 : index
      %c0_34 = arith.constant 0 : index
      %93 = vector.load %arg6[%c0_32, %c0_33, %c0_34] : memref<18x18x4xf32, #tpu.memory_space<vmem>>, vector<1x18x4xf32>
      tpu.vector_store %arg6[%c0_32, %c0_33, %c0_34], %92 {strides = array<i32>} : memref<18x18x4xf32, #tpu.memory_space<vmem>>, vector<1x18x4xf32>,
      %cst_35 = arith.constant 0.000000e+00 : f32
      %94 = vector.broadcast %cst_35 : f32 to vector<16x1x4xf32>
      %c1_36 = arith.constant 1 : index
      %c0_37 = arith.constant 0 : index
      %c0_38 = arith.constant 0 : index
      %95 = vector.load %arg6[%c1_36, %c0_37, %c0_38] : memref<18x18x4xf32, #tpu.memory_space<vmem>>, vector<16x1x4xf32>
      tpu.vector_store %arg6[%c1_36, %c0_37, %c0_38], %94 {strides = array<i32>} : memref<18x18x4xf32, #tpu.memory_space<vmem>>, vector<16x1x4xf32>,
      %cst_39 = arith.constant 0.000000e+00 : f32
      %96 = vector.broadcast %cst_39 : f32 to vector<16x1x4xf32>
      %c1_40 = arith.constant 1 : index
      %c17 = arith.constant 17 : index
      %c0_41 = arith.constant 0 : index
      %97 = vector.load %arg6[%c1_40, %c17, %c0_41] : memref<18x18x4xf32, #tpu.memory_space<vmem>>, vector<16x1x4xf32>
      tpu.vector_store %arg6[%c1_40, %c17, %c0_41], %96 {strides = array<i32>} : memref<18x18x4xf32, #tpu.memory_space<vmem>>, vector<16x1x4xf32>,
      %cst_42 = arith.constant 0.000000e+00 : f32
      %98 = vector.broadcast %cst_42 : f32 to vector<1x18x4xf32>
      %c17_43 = arith.constant 17 : index
      %c0_44 = arith.constant 0 : index
      %c0_45 = arith.constant 0 : index
      %99 = vector.load %arg6[%c17_43, %c0_44, %c0_45] : memref<18x18x4xf32, #tpu.memory_space<vmem>>, vector<1x18x4xf32>
      tpu.vector_store %arg6[%c17_43, %c0_44, %c0_45], %98 {strides = array<i32>} : memref<18x18x4xf32, #tpu.memory_space<vmem>>, vector<1x18x4xf32>,
      %c0_46 = arith.constant 0 : index
      %c0_47 = arith.constant 0 : index
      %c0_48 = arith.constant 0 : index
      %c0_49 = arith.constant 0 : index
      %100 = vector.load %arg3[%c0_46, %c0_47, %c0_48, %c0_49] : memref<1x16x16x4xf32, #tpu.memory_space<vmem>>, vector<1x16x16x4xf32>
      %101 = vector.shape_cast %100 : vector<1x16x16x4xf32> to vector<16x16x4xf32>
      %c1_50 = arith.constant 1 : index
      %c1_51 = arith.constant 1 : index
      %c0_52 = arith.constant 0 : index
      %102 = vector.load %arg6[%c1_50, %c1_51, %c0_52] : memref<18x18x4xf32, #tpu.memory_space<vmem>>, vector<16x16x4xf32>
      tpu.vector_store %arg6[%c1_50, %c1_51, %c0_52], %101 {strides = array<i32>} : memref<18x18x4xf32, #tpu.memory_space<vmem>>, vector<16x16x4xf32>,
    } else {
    }
    %c0 = arith.constant 0 : index
    %c0_1 = arith.constant 0 : index
    %3 = vector.load %arg4[%c0, %c0_1] : memref<9x4xf32, #tpu.memory_space<vmem>>, vector<9x4xf32>
    %c16_i32 = arith.constant 16 : i32
    %4 = arith.muli %arg2, %c16_i32 : i32
    %c0_i32_2 = arith.constant 0 : i32
    %5 = arith.addi %4, %c0_i32_2 : i32
    %c1_i32 = arith.constant 1 : i32
    %6 = arith.muli %5, %c1_i32 : i32
    %cst = arith.constant 0.000000e+00 : f32
    %7 = vector.broadcast %cst : f32 to vector<16x16x4xf32>
    %c0_i32_3 = arith.constant 0 : i32
    %8 = arith.addi %6, %c0_i32_3 : i32
    %9 = arith.index_cast %8 : i32 to index
    %c0_4 = arith.constant 0 : index
    %c0_5 = arith.constant 0 : index
    %10 = vector.load %arg6[%9, %c0_4, %c0_5] : memref<18x18x4xf32, #tpu.memory_space<vmem>>, vector<16x16x4xf32>
    %11 = vector.extract_strided_slice %3 {offsets = [0, 0], sizes = [1, 4], strides = [1, 1]} : vector<9x4xf32> to vector<1x4xf32>
    %12 = vector.shape_cast %11 : vector<1x4xf32> to vector<4xf32>
    %13 = vector.shape_cast %12 : vector<4xf32> to vector<1x1x4xf32>
    %14 = vector.broadcast %13 : vector<1x1x4xf32> to vector<16x16x4xf32>
    %15 = arith.mulf %10, %14 : vector<16x16x4xf32>
    %16 = arith.addf %7, %15 : vector<16x16x4xf32>
    %c0_i32_6 = arith.constant 0 : i32
    %17 = arith.addi %6, %c0_i32_6 : i32
    %18 = arith.index_cast %17 : i32 to index
    %c1 = arith.constant 1 : index
    %c0_7 = arith.constant 0 : index
    %19 = vector.load %arg6[%18, %c1, %c0_7] : memref<18x18x4xf32, #tpu.memory_space<vmem>>, vector<16x16x4xf32>
    %20 = vector.extract_strided_slice %3 {offsets = [1, 0], sizes = [1, 4], strides = [1, 1]} : vector<9x4xf32> to vector<1x4xf32>
    %21 = vector.shape_cast %20 : vector<1x4xf32> to vector<4xf32>
    %22 = vector.shape_cast %21 : vector<4xf32> to vector<1x1x4xf32>
    %23 = vector.broadcast %22 : vector<1x1x4xf32> to vector<16x16x4xf32>
    %24 = arith.mulf %19, %23 : vector<16x16x4xf32>
    %25 = arith.addf %16, %24 : vector<16x16x4xf32>
    %c0_i32_8 = arith.constant 0 : i32
    %26 = arith.addi %6, %c0_i32_8 : i32
    %27 = arith.index_cast %26 : i32 to index
    %c2 = arith.constant 2 : index
    %c0_9 = arith.constant 0 : index
    %28 = vector.load %arg6[%27, %c2, %c0_9] : memref<18x18x4xf32, #tpu.memory_space<vmem>>, vector<16x16x4xf32>
    %29 = vector.extract_strided_slice %3 {offsets = [2, 0], sizes = [1, 4], strides = [1, 1]} : vector<9x4xf32> to vector<1x4xf32>
    %30 = vector.shape_cast %29 : vector<1x4xf32> to vector<4xf32>
    %31 = vector.shape_cast %30 : vector<4xf32> to vector<1x1x4xf32>
    %32 = vector.broadcast %31 : vector<1x1x4xf32> to vector<16x16x4xf32>
    %33 = arith.mulf %28, %32 : vector<16x16x4xf32>
    %34 = arith.addf %25, %33 : vector<16x16x4xf32>
    %c1_i32_10 = arith.constant 1 : i32
    %35 = arith.addi %6, %c1_i32_10 : i32
    %36 = arith.index_cast %35 : i32 to index
    %c0_11 = arith.constant 0 : index
    %c0_12 = arith.constant 0 : index
    %37 = vector.load %arg6[%36, %c0_11, %c0_12] : memref<18x18x4xf32, #tpu.memory_space<vmem>>, vector<16x16x4xf32>
    %38 = vector.extract_strided_slice %3 {offsets = [3, 0], sizes = [1, 4], strides = [1, 1]} : vector<9x4xf32> to vector<1x4xf32>
    %39 = vector.shape_cast %38 : vector<1x4xf32> to vector<4xf32>
    %40 = vector.shape_cast %39 : vector<4xf32> to vector<1x1x4xf32>
    %41 = vector.broadcast %40 : vector<1x1x4xf32> to vector<16x16x4xf32>
    %42 = arith.mulf %37, %41 : vector<16x16x4xf32>
    %43 = arith.addf %34, %42 : vector<16x16x4xf32>
    %c1_i32_13 = arith.constant 1 : i32
    %44 = arith.addi %6, %c1_i32_13 : i32
    %45 = arith.index_cast %44 : i32 to index
    %c1_14 = arith.constant 1 : index
    %c0_15 = arith.constant 0 : index
    %46 = vector.load %arg6[%45, %c1_14, %c0_15] : memref<18x18x4xf32, #tpu.memory_space<vmem>>, vector<16x16x4xf32>
    %47 = vector.extract_strided_slice %3 {offsets = [4, 0], sizes = [1, 4], strides = [1, 1]} : vector<9x4xf32> to vector<1x4xf32>
    %48 = vector.shape_cast %47 : vector<1x4xf32> to vector<4xf32>
    %49 = vector.shape_cast %48 : vector<4xf32> to vector<1x1x4xf32>
    %50 = vector.broadcast %49 : vector<1x1x4xf32> to vector<16x16x4xf32>
    %51 = arith.mulf %46, %50 : vector<16x16x4xf32>
    %52 = arith.addf %43, %51 : vector<16x16x4xf32>
    %c1_i32_16 = arith.constant 1 : i32
    %53 = arith.addi %6, %c1_i32_16 : i32
    %54 = arith.index_cast %53 : i32 to index
    %c2_17 = arith.constant 2 : index
    %c0_18 = arith.constant 0 : index
    %55 = vector.load %arg6[%54, %c2_17, %c0_18] : memref<18x18x4xf32, #tpu.memory_space<vmem>>, vector<16x16x4xf32>
    %56 = vector.extract_strided_slice %3 {offsets = [5, 0], sizes = [1, 4], strides = [1, 1]} : vector<9x4xf32> to vector<1x4xf32>
    %57 = vector.shape_cast %56 : vector<1x4xf32> to vector<4xf32>
    %58 = vector.shape_cast %57 : vector<4xf32> to vector<1x1x4xf32>
    %59 = vector.broadcast %58 : vector<1x1x4xf32> to vector<16x16x4xf32>
    %60 = arith.mulf %55, %59 : vector<16x16x4xf32>
    %61 = arith.addf %52, %60 : vector<16x16x4xf32>
    %c2_i32 = arith.constant 2 : i32
    %62 = arith.addi %6, %c2_i32 : i32
    %63 = arith.index_cast %62 : i32 to index
    %c0_19 = arith.constant 0 : index
    %c0_20 = arith.constant 0 : index
    %64 = vector.load %arg6[%63, %c0_19, %c0_20] : memref<18x18x4xf32, #tpu.memory_space<vmem>>, vector<16x16x4xf32>
    %65 = vector.extract_strided_slice %3 {offsets = [6, 0], sizes = [1, 4], strides = [1, 1]} : vector<9x4xf32> to vector<1x4xf32>
    %66 = vector.shape_cast %65 : vector<1x4xf32> to vector<4xf32>
    %67 = vector.shape_cast %66 : vector<4xf32> to vector<1x1x4xf32>
    %68 = vector.broadcast %67 : vector<1x1x4xf32> to vector<16x16x4xf32>
    %69 = arith.mulf %64, %68 : vector<16x16x4xf32>
    %70 = arith.addf %61, %69 : vector<16x16x4xf32>
    %c2_i32_21 = arith.constant 2 : i32
    %71 = arith.addi %6, %c2_i32_21 : i32
    %72 = arith.index_cast %71 : i32 to index
    %c1_22 = arith.constant 1 : index
    %c0_23 = arith.constant 0 : index
    %73 = vector.load %arg6[%72, %c1_22, %c0_23] : memref<18x18x4xf32, #tpu.memory_space<vmem>>, vector<16x16x4xf32>
    %74 = vector.extract_strided_slice %3 {offsets = [7, 0], sizes = [1, 4], strides = [1, 1]} : vector<9x4xf32> to vector<1x4xf32>
    %75 = vector.shape_cast %74 : vector<1x4xf32> to vector<4xf32>
    %76 = vector.shape_cast %75 : vector<4xf32> to vector<1x1x4xf32>
    %77 = vector.broadcast %76 : vector<1x1x4xf32> to vector<16x16x4xf32>
    %78 = arith.mulf %73, %77 : vector<16x16x4xf32>
    %79 = arith.addf %70, %78 : vector<16x16x4xf32>
    %c2_i32_24 = arith.constant 2 : i32
    %80 = arith.addi %6, %c2_i32_24 : i32
    %81 = arith.index_cast %80 : i32 to index
    %c2_25 = arith.constant 2 : index
    %c0_26 = arith.constant 0 : index
    %82 = vector.load %arg6[%81, %c2_25, %c0_26] : memref<18x18x4xf32, #tpu.memory_space<vmem>>, vector<16x16x4xf32>
    %83 = vector.extract_strided_slice %3 {offsets = [8, 0], sizes = [1, 4], strides = [1, 1]} : vector<9x4xf32> to vector<1x4xf32>
    %84 = vector.shape_cast %83 : vector<1x4xf32> to vector<4xf32>
    %85 = vector.shape_cast %84 : vector<4xf32> to vector<1x1x4xf32>
    %86 = vector.broadcast %85 : vector<1x1x4xf32> to vector<16x16x4xf32>
    %87 = arith.mulf %82, %86 : vector<16x16x4xf32>
    %88 = arith.addf %79, %87 : vector<16x16x4xf32>
    %c0_27 = arith.constant 0 : index
    %c0_28 = arith.constant 0 : index
    %c0_29 = arith.constant 0 : index
    %c0_30 = arith.constant 0 : index
    %89 = vector.load %arg5[%c0_27, %c0_28, %c0_29, %c0_30] : memref<1x16x16x4xf32, #tpu.memory_space<vmem>>, vector<1x16x16x4xf32>
    %90 = vector.shape_cast %89 : vector<1x16x16x4xf32> to vector<16x16x4xf32>
    %91 = vector.shape_cast %88 : vector<16x16x4xf32> to vector<1x16x16x4xf32>
    tpu.vector_store %arg5[%c0_27, %c0_28, %c0_29, %c0_30], %91 {strides = array<i32>} : memref<1x16x16x4xf32, #tpu.memory_space<vmem>>, vector<1x16x16x4xf32>,
    return
  }
  func.func @transform_0(%arg0: i32, %arg1: i32, %arg2: i32) -> (i32, i32, i32, i32) {
    %c0_i32 = arith.constant 0 : i32
    %c0_i32_0 = arith.constant 0 : i32
    %c0_i32_1 = arith.constant 0 : i32
    return %arg0, %c0_i32, %c0_i32_0, %arg1 : i32, i32, i32, i32
  }
  func.func @transform_1(%arg0: i32, %arg1: i32, %arg2: i32) -> (i32, i32) {
    %c0_i32 = arith.constant 0 : i32
    %c0_i32_0 = arith.constant 0 : i32
    return %c0_i32, %arg1 : i32, i32
  }
  func.func @transform_2(%arg0: i32, %arg1: i32, %arg2: i32) -> (i32, i32, i32, i32) {
    %c0_i32 = arith.constant 0 : i32
    %c0_i32_0 = arith.constant 0 : i32
    return %arg0, %arg2, %c0_i32, %arg1 : i32, i32, i32, i32
  }
}

</mosaic_0001>

<bundles_post_ra>
// kernel: tpu_custom_call.1
= control target key start
LH: loop header
LB: loop body
LE: loop exit
PB: predicated region body
PF: predicated region fallthrough
CT: control target
= control target key end

     0   :  { %s1644_s9 = smov 0   ;;  %s1646_s10 = smov 0   ;;  %s2233_s0 = inlined_call_operand.vmem [shape: f32[2,16,16,4], index: 0, kind: input, shape index: {}]   ;;  %s2234_s1 = inlined_call_operand.vmem [shape: f32[9,4], index: 1, kind: input, shape index: {}]   ;;  %s2235_s2 = inlined_call_operand.vmem [shape: f32[2,16,16,4], index: 2, kind: output, shape index: {}]  }
   0x1   :  { %s1648_s11 = smov 0  }
   0x2 LB: > { %s31_s12 = sadd.s32 1, %s1622_s10  ;;  %p1376_p0 = scmp.ge.s32.totalorder %s1626_s11, 1  ;;  %s1626_s11 = sphi %s1648_s11, %s12_s11   ;;  %s1622_s10 = sphi %s1646_s10, %s2237_s10   ;;  %s1618_s9 = sphi %s1644_s9, %s2236_s9  }
   0x3   : > { %p33_p1 = scmp.ge.s32.totalorder %s31_s12, 2  ;;  %p149_p2 = scmp.lt.s32.totalorder %s1626_s11, 3 }
   0x5   : > { %s2239_s12 = smov (%p33_p1, %s31_s12), 0  ;;  %p150_p3 = pnand %p1376_p0, %p149_p2 }
   0x6   : > { %p186_p4 = scmp.lt.s32.totalorder (!%p150_p3), %s1618_s9, 1 }
   0x7   : > { %153 = sbr.rel (%p150_p3) target bundleno = 202 (0xca), region = 28 }
   0xc   : > { %vm216_vm0 = vcmask 31744   ;;  %v1628_v0 = vmov 0.0   ;;  %vm219_vm1 = vcmask 25600   ;;  %vm222_vm2 = vcmask 24576   ;;  %s2241_s9 = smov (!%p186_p4, %s1618_s9), 1  ;;  %v323_v4 = vld [vmem:[%s2234_s1] sm:$0xff] }
   0xd   : > { %217 = vst.msk [vmem:[#allocation2] sm:$0xff] %vm216_vm0, %v1628_v0  ;;  %s1575_s13 = sshll.u32 %s2241_s9, 8  ;;  %v1718_v6 = vperm.slane %v323_v4, 0  ;;  %v1720_v8 = vperm.slane %v323_v4, 1  ;;  %v1724_v11 = vperm.slane %v323_v4, 2  ;;  %v1740_v26 = vperm.slane %v323_v4, 3 }
   0xe   : > { %218 = vst.msk [vmem:[#allocation2 + $0x8] sm:$0xff] %vm216_vm0, %v1628_v0  ;;  %s1705_s16 = scalar_lea.vmem %s2233_s0, %s1575_s13  ;;  %v1746_v31 = vperm.slane %v323_v4, 4  ;;  %v1753_v38 = vperm.slane %v323_v4, 5  ;;  %v1759_v45 = vperm.slane %v323_v4, 6  ;;  %v1765_v51 = vperm.slane %v323_v4, 7  ;;  %s1900_s23 = scalar_lea.vmem %s2235_s2, %s1575_s13 }
   0xf   : > { %256 = vst.msk [vmem:[#allocation2 + $0x198] sm:$0xff] %vm216_vm0, %v1628_v0  ;;  %v259_v1 = vld [vmem:[%s1705_s16] sm:$0xff]  ;;  %v260_v2 = vld [vmem:[%s1705_s16 + $0x8] sm:$0xff]  ;;  %v261_v3 = vld [vmem:[%s1705_s16 + $0x10] sm:$0xff] }
  0x10   : > { %257 = vst.msk [vmem:[#allocation2 + $0x1a0] sm:$0xff] %vm216_vm0, %v1628_v0  ;;  %v262_v9 = vld [vmem:[%s1705_s16 + $0x18] sm:$0xff]  ;;  %v263_v12 = vld [vmem:[%s1705_s16 + $0x20] sm:$0xff]  ;;  %v264_v16 = vld [vmem:[%s1705_s16 + $0x28] sm:$0xff] }
  0x11   : > { %220 = vst.msk [vmem:[#allocation2 + $0x10] sm:$0x3] %vm219_vm1, %v1628_v0  ;;  %v265_v21 = vld [vmem:[%s1705_s16 + $0x30] sm:$0xff]  ;;  %v266_v25 = vld [vmem:[%s1705_s16 + $0x38] sm:$0xff]  ;;  %v267_v27 = vld [vmem:[%s1705_s16 + $0x40] sm:$0xff] }
  0x12   : > { %258 = vst.msk [vmem:[#allocation2 + $0x1a8] sm:$0x3] %vm219_vm1, %v1628_v0  ;;  %v268_v29 = vld [vmem:[%s1705_s16 + $0x48] sm:$0xff]  ;;  %v269_v32 = vld [vmem:[%s1705_s16 + $0x50] sm:$0xff]  ;;  %v270_v36 = vld [vmem:[%s1705_s16 + $0x58] sm:$0xff] }
  0x13   : > { %223 = vst.msk [vmem:[#allocation2 + $0x18] sm:$0x1] %vm222_vm2, %v1628_v0  ;;  %v271_v43 = vld [vmem:[%s1705_s16 + $0x60] sm:$0xff]  ;;  %v272_v47 = vld [vmem:[%s1705_s16 + $0x68] sm:$0xff]  ;;  %v273_v53 = vld [vmem:[%s1705_s16 + $0x70] sm:$0xff] }
  0x14   : > { %224 = vst.msk [vmem:[#allocation2 + $0x30] sm:$0x1] %vm222_vm2, %v1628_v0  ;;  %v328_v5 = vld [vmem:[#allocation2] sm:$0xff]  ;;  %v274_v57 = vld [vmem:[%s1705_s16 + $0x78] sm:$0xff]  ;;  %v1776_v60 = vld [vmem:[%s2234_s1 + $0x8] ss:$0 sm:$0xff] }
  0x15   : > { %225 = vst.msk [vmem:[#allocation2 + $0x48] sm:$0x1] %vm222_vm2, %v1628_v0  ;;  %v425_v7 = vld [vmem:[#allocation2 + $0x1] sm:$0xff]  ;;  %v361_v13 = vmul.f32 %v1718_v6, %v328_v5 }
  0x16   : > { %226 = vst.msk [vmem:[#allocation2 + $0x60] sm:$0x1] %vm222_vm2, %v1628_v0  ;;  %v522_v10 = vld [vmem:[#allocation2 + $0x2] sm:$0xff]  ;;  %v458_v14 = vmul.f32 %v1720_v8, %v425_v7 }
  0x17   : > { %227 = vst.msk [vmem:[#allocation2 + $0x78] sm:$0x1] %vm222_vm2, %v1628_v0  ;;  %v329_v15 = vld [vmem:[#allocation2 + $0x8] sm:$0xff]  ;;  %v555_v17 = vmul.f32 %v1724_v11, %v522_v10 }
  0x18   : > { %228 = vst.msk [vmem:[#allocation2 + $0x90] sm:$0x1] %vm222_vm2, %v1628_v0  ;;  %v362_v18 = vmul.f32 %v1718_v6, %v329_v15  ;;  %v426_v19 = vld [vmem:[#allocation2 + $0x9] sm:$0xff]  ;;  %v490_v22 = vadd.f32 %v458_v14, %v361_v13 }
  0x19   : > { %229 = vst.msk [vmem:[#allocation2 + $0xa8] sm:$0x1] %vm222_vm2, %v1628_v0  ;;  %v523_v20 = vld [vmem:[#allocation2 + $0xa] sm:$0xff]  ;;  %v459_v23 = vmul.f32 %v1720_v8, %v426_v19 }
  0x1a   : > { %230 = vst.msk [vmem:[#allocation2 + $0xc0] sm:$0x1] %vm222_vm2, %v1628_v0  ;;  %v556_v24 = vmul.f32 %v1724_v11, %v523_v20  ;;  %v587_v30 = vadd.f32 %v555_v17, %v490_v22  ;;  %v276_v5 = vld [vmem:[%s1705_s16 + $0x88] sm:$0xff]  ;;  %v277_v14 = vld [vmem:[%s1705_s16 + $0x90] sm:$0xff] }
  0x1b   : > { %231 = vst.msk [vmem:[#allocation2 + $0xd8] sm:$0x1] %vm222_vm2, %v1628_v0  ;;  %v491_v28 = vadd.f32 %v459_v23, %v362_v18 }
  0x1c   : > { %232 = vst.msk [vmem:[#allocation2 + $0xf0] sm:$0x1] %vm222_vm2, %v1628_v0 }
  0x1d   : > { %233 = vst.msk [vmem:[#allocation2 + $0x108] sm:$0x1] %vm222_vm2, %v1628_v0  ;;  %v588_v35 = vadd.f32 %v556_v24, %v491_v28 }
  0x1e   : > { %234 = vst.msk [vmem:[#allocation2 + $0x120] sm:$0x1] %vm222_vm2, %v1628_v0 }
  0x1f   : > { %235 = vst.msk [vmem:[#allocation2 + $0x138] sm:$0x1] %vm222_vm2, %v1628_v0 }
  0x20   : > { %236 = vst.msk [vmem:[#allocation2 + $0x150] sm:$0x1] %vm222_vm2, %v1628_v0 }
  0x21   : > { %237 = vst.msk [vmem:[#allocation2 + $0x168] sm:$0x1] %vm222_vm2, %v1628_v0 }
  0x22   : > { %238 = vst.msk [vmem:[#allocation2 + $0x180] sm:$0x1] %vm222_vm2, %v1628_v0 }
  0x23   : > { %239 = vst.msk [vmem:[#allocation2 + $0x29] sm:$0x1] %vm222_vm2, %v1628_v0 }
  0x24   : > { %240 = vst.msk [vmem:[#allocation2 + $0x41] sm:$0x1] %vm222_vm2, %v1628_v0 }
  0x25   : > { %241 = vst.msk [vmem:[#allocation2 + $0x59] sm:$0x1] %vm222_vm2, %v1628_v0 }
  0x26   : > { %242 = vst.msk [vmem:[#allocation2 + $0x71] sm:$0x1] %vm222_vm2, %v1628_v0 }
  0x27   : > { %243 = vst.msk [vmem:[#allocation2 + $0x89] sm:$0x1] %vm222_vm2, %v1628_v0 }
  0x28   : > { %244 = vst.msk [vmem:[#allocation2 + $0xa1] sm:$0x1] %vm222_vm2, %v1628_v0 }
  0x29   : > { %245 = vst.msk [vmem:[#allocation2 + $0xb9] sm:$0x1] %vm222_vm2, %v1628_v0 }
  0x2a   : > { %246 = vst.msk [vmem:[#allocation2 + $0xd1] sm:$0x1] %vm222_vm2, %v1628_v0 }
  0x2b   : > { %247 = vst.msk [vmem:[#allocation2 + $0xe9] sm:$0x1] %vm222_vm2, %v1628_v0 }
  0x2c   : > { %248 = vst.msk [vmem:[#allocation2 + $0x101] sm:$0x1] %vm222_vm2, %v1628_v0 }
  0x2d   : > { %249 = vst.msk [vmem:[#allocation2 + $0x119] sm:$0x1] %vm222_vm2, %v1628_v0 }
  0x2e   : > { %250 = vst.msk [vmem:[#allocation2 + $0x131] sm:$0x1] %vm222_vm2, %v1628_v0 }
  0x2f   : > { %251 = vst.msk [vmem:[#allocation2 + $0x149] sm:$0x1] %vm222_vm2, %v1628_v0 }
  0x30   : > { %252 = vst.msk [vmem:[#allocation2 + $0x161] sm:$0x1] %vm222_vm2, %v1628_v0 }
  0x31   : > { %253 = vst.msk [vmem:[#allocation2 + $0x179] sm:$0x1] %vm222_vm2, %v1628_v0 }
  0x32   : > { %254 = vst.msk [vmem:[#allocation2 + $0x191] sm:$0x1] %vm222_vm2, %v1628_v0  ;;  %v275_v0 = vld [vmem:[%s1705_s16 + $0x80] sm:$0xff] }
  0x33   : > { %291 = vst.msk [vmem:[#allocation2 + $0x19] sm:$0xff] %vm216_vm0, %v259_v1 }
  0x34   : > { %292 = vst.msk [vmem:[#allocation2 + $0x21] sm:$0xff] %vm216_vm0, %v260_v2 }
  0x35   : > { %293 = vst.msk [vmem:[#allocation2 + $0x31] sm:$0xff] %vm216_vm0, %v261_v3 }
  0x36   : > { %294 = vst.msk [vmem:[#allocation2 + $0x39] sm:$0xff] %vm216_vm0, %v262_v9 }
  0x37   : > { %295 = vst.msk [vmem:[#allocation2 + $0x49] sm:$0xff] %vm216_vm0, %v263_v12 }
  0x38   : > { %296 = vst.msk [vmem:[#allocation2 + $0x51] sm:$0xff] %vm216_vm0, %v264_v16 }
  0x39   : > { %297 = vst.msk [vmem:[#allocation2 + $0x61] sm:$0xff] %vm216_vm0, %v265_v21  ;;  %v278_v21 = vld [vmem:[%s1705_s16 + $0x98] sm:$0xff] }
  0x3a   : > { %298 = vst.msk [vmem:[#allocation2 + $0x69] sm:$0xff] %vm216_vm0, %v266_v25  ;;  %v1381_v33 = vld [vmem:[#allocation2 + $0x18] sm:$0xff] }
  0x3b   : > { %v1413_v34 = vld [vmem:[#allocation2 + $0x19] sm:$0xff]  ;;  %299 = vst.msk [vmem:[#allocation2 + $0x79] sm:$0xff] %vm216_vm0, %v267_v27  ;;  %v655_v37 = vmul.f32 %v1381_v33, %v1740_v26  ;;  %v1414_v40 = vld [vmem:[#allocation2 + $0x21] sm:$0xff]  ;;  %v363_v41 = vmul.f32 %v1381_v33, %v1718_v6 }
  0x3c   : > { %v1382_v39 = vld [vmem:[#allocation2 + $0x20] sm:$0xff]  ;;  %v460_v42 = vmul.f32 %v1413_v34, %v1720_v8  ;;  %300 = vst.msk [vmem:[#allocation2 + $0x81] sm:$0xff] %vm216_vm0, %v268_v29  ;;  %v752_v49 = vmul.f32 %v1413_v34, %v1746_v31  ;;  %v1477_v50 = vld [vmem:[#allocation2 + $0x30] sm:$0xff]  ;;  %v753_v56 = vmul.f32 %v1414_v40, %v1746_v31  ;;  %v461_v20 = vmul.f32 %v1414_v40, %v1720_v8  ;;  %v280_v34 = vld [vmem:[%s1705_s16 + $0xa8] sm:$0xff] }
  0x3d   : > { %v1445_v44 = vld [vmem:[#allocation2 + $0x1a] sm:$0xff]  ;;  %v656_v46 = vmul.f32 %v1382_v39, %v1740_v26  ;;  %301 = vst.msk [vmem:[#allocation2 + $0x91] sm:$0xff] %vm216_vm0, %v269_v32  ;;  %v687_v48 = vadd.f32 %v655_v37, %v587_v30  ;;  %v1446_v52 = vld [vmem:[#allocation2 + $0x22] sm:$0xff]  ;;  %v1509_v54 = vld [vmem:[#allocation2 + $0x31] sm:$0xff]  ;;  %v949_v1 = vmul.f32 %v1477_v50, %v1759_v45  ;;  %v657_v13 = vmul.f32 %v1477_v50, %v1740_v26 }
  0x3e   : > { %302 = vst.msk [vmem:[#allocation2 + $0x99] sm:$0xff] %vm216_vm0, %v270_v36  ;;  %v849_v59 = vmul.f32 %v1445_v44, %v1753_v38  ;;  %v1778_v61 = vld [vmem:[#allocation2 + $0x38] sm:$0xff]  ;;  %v492_v62 = vadd.f32 %v460_v42, %v363_v41  ;;  %v557_v63 = vmul.f32 %v1445_v44, %v1724_v11  ;;  %v850_v4 = vmul.f32 %v1446_v52, %v1753_v38  ;;  %v1797_v18 = vld [vmem:[#allocation2 + $0x48] sm:$0xff]  ;;  %v279_v27 = vld [vmem:[%s1705_s16 + $0xa0] sm:$0xff] }
  0x3f   : > { %v688_v55 = vadd.f32 %v656_v46, %v588_v35  ;;  %303 = vst.msk [vmem:[#allocation2 + $0xa9] sm:$0xff] %vm216_vm0, %v271_v43  ;;  %v784_v58 = vadd.f32 %v752_v49, %v687_v48  ;;  %v1541_v2 = vld [vmem:[#allocation2 + $0x32] sm:$0xff]  ;;  %v1046_v9 = vmul.f32 %v1509_v54, %v1765_v51  ;;  %v950_v16 = vmul.f32 %v1778_v61, %v1759_v45  ;;  %v1795_v17 = vld [vmem:[#allocation2 + $0x3a] sm:$0xff]  ;;  %v1809_v30 = vld [vmem:[#allocation2 + $0x49] sm:$0xff] }
  0x40   : > { %304 = vst.msk [vmem:[#allocation2 + $0xb1] sm:$0xff] %vm216_vm0, %v272_v47  ;;  %v1788_v10 = vld [vmem:[#allocation2 + $0x39] sm:$0xff]  ;;  %v589_v12 = vadd.f32 %v557_v63, %v492_v62  ;;  %v364_v19 = vmul.f32 %v1382_v39, %v1718_v6  ;;  %v1143_v23 = vmul.f32 %v1776_v60, %v1541_v2  ;;  %v754_v25 = vmul.f32 %v1509_v54, %v1746_v31  ;;  %v281_v40 = vld [vmem:[%s1705_s16 + $0xb0] sm:$0xff]  ;;  %v284_v63 = vld [vmem:[%s1705_s16 + $0xc8] sm:$0xff] }
  0x41   : > { %v785_v3 = vadd.f32 %v753_v56, %v688_v55  ;;  %305 = vst.msk [vmem:[#allocation2 + $0xc1] sm:$0xff] %vm216_vm0, %v273_v53  ;;  %v881_v7 = vadd.f32 %v849_v59, %v784_v58  ;;  %v1047_v29 = vmul.f32 %v1788_v10, %v1765_v51  ;;  %v558_v33 = vmul.f32 %v1446_v52, %v1724_v11  ;;  %v1821_v41 = vld [vmem:[#allocation2 + $0x4a] sm:$0xff]  ;;  %v282_v48 = vld [vmem:[%s1705_s16 + $0xb8] sm:$0xff]  ;;  %v283_v56 = vld [vmem:[%s1705_s16 + $0xc0] sm:$0xff] }
  0x42   : > { %306 = vst.msk [vmem:[#allocation2 + $0xc9] sm:$0xff] %vm216_vm0, %v274_v57  ;;  %v689_v24 = vadd.f32 %v657_v13, %v589_v12  ;;  %v493_v32 = vadd.f32 %v461_v20, %v364_v19  ;;  %v1144_v35 = vmul.f32 %v1776_v60, %v1795_v17  ;;  %v851_v37 = vmul.f32 %v1541_v2, %v1753_v38  ;;  %v1825_v44 = vld [vmem:[#allocation2 + $0x50] sm:$0xff]  ;;  %v286_v13 = vld [vmem:[%s1705_s16 + $0xd8] sm:$0xff]  ;;  %v1862_v19 = vld [vmem:[#allocation2 + $0x60] sm:$0xff] }
  0x43   : > { %v882_v15 = vadd.f32 %v850_v4, %v785_v3  ;;  %307 = vst.msk [vmem:[#allocation2 + $0xd9] sm:$0xff] %vm216_vm0, %v275_v0  ;;  %v981_v22 = vadd.f32 %v949_v1, %v881_v7  ;;  %v951_v39 = vmul.f32 %v1797_v18, %v1759_v45  ;;  %v658_v43 = vmul.f32 %v1778_v61, %v1740_v26  ;;  %v1837_v58 = vld [vmem:[#allocation2 + $0x51] sm:$0xff] }
  0x44   : > { %308 = vst.msk [vmem:[#allocation2 + $0xe1] sm:$0xff] %vm216_vm0, %v276_v5  ;;  %v786_v36 = vadd.f32 %v754_v25, %v689_v24  ;;  %v590_v42 = vadd.f32 %v558_v33, %v493_v32  ;;  %v365_v46 = vmul.f32 %v1477_v50, %v1718_v6  ;;  %v462_v47 = vmul.f32 %v1509_v54, %v1720_v8  ;;  %v1839_v54 = vld [vmem:[#allocation2 + $0x52] sm:$0xff]  ;;  %v1870_v25 = vld [vmem:[#allocation2 + $0x61] sm:$0xff] }
  0x45   : > { %v982_v28 = vadd.f32 %v950_v16, %v882_v15  ;;  %309 = vst.msk [vmem:[#allocation2 + $0xf1] sm:$0xff] %vm216_vm0, %v277_v14  ;;  %v1078_v49 = vadd.f32 %v1046_v9, %v981_v22  ;;  %v1048_v53 = vmul.f32 %v1809_v30, %v1765_v51  ;;  %v755_v55 = vmul.f32 %v1788_v10, %v1746_v31  ;;  %v285_v5 = vld [vmem:[%s1705_s16 + $0xd0] sm:$0xff] }
  0x46   : > { %310 = vst.msk [vmem:[#allocation2 + $0xf9] sm:$0xff] %vm216_vm0, %v278_v21  ;;  %v883_v52 = vadd.f32 %v851_v37, %v786_v36  ;;  %v690_v50 = vadd.f32 %v658_v43, %v590_v42  ;;  %v494_v59 = vadd.f32 %v462_v47, %v365_v46  ;;  %v559_v62 = vmul.f32 %v1541_v2, %v1724_v11 }
  0x47   : > { %311 = vst.msk [vmem:[#allocation2 + $0x109] sm:$0xff] %vm216_vm0, %v279_v27  ;;  %v1079_v57 = vadd.f32 %v1047_v29, %v982_v28  ;;  %v1145_v1 = vmul.f32 %v1776_v60, %v1821_v41  ;;  %v852_v3 = vmul.f32 %v1795_v17, %v1753_v38  ;;  %v952_v4 = vmul.f32 %v1825_v44, %v1759_v45  ;;  %v288_v27 = vld [vmem:[%s1705_s16 + $0xe8] sm:$0xff] }
  0x48   : > { %312 = vst.msk [vmem:[#allocation2 + $0x111] sm:$0xff] %vm216_vm0, %v280_v34  ;;  %v983_v0 = vadd.f32 %v951_v39, %v883_v52  ;;  %v787_v7 = vadd.f32 %v755_v55, %v690_v50  ;;  %v591_v9 = vadd.f32 %v559_v62, %v494_v59  ;;  %v659_v2 = vmul.f32 %v1797_v18, %v1740_v26  ;;  %v1876_v29 = vld [vmem:[#allocation2 + $0x62] sm:$0xff]  ;;  %v289_v34 = vld [vmem:[%s1705_s16 + $0xf0] sm:$0xff] }
  0x49   : > { %313 = vst.msk [vmem:[#allocation2 + $0x121] sm:$0xff] %vm216_vm0, %v281_v40  ;;  %v366_v12 = vmul.f32 %v1778_v61, %v1718_v6  ;;  %v1175_v14 = vadd.f32 %v1143_v23, %v1078_v49  ;;  %v1049_v15 = vmul.f32 %v1837_v58, %v1765_v51  ;;  %v1146_v16 = vmul.f32 %v1776_v60, %v1839_v54  ;;  %v287_v61 = vld [vmem:[%s1705_s16 + $0xe0] sm:$0xff]  ;;  %v290_v40 = vld [vmem:[%s1705_s16 + $0xf8] sm:$0xff]  ;;  %v1514_v55 = vld [vmem:[#allocation2 + $0x69] sm:$0xff] }
  0x4a   : > { %314 = vst.msk [vmem:[#allocation2 + $0x129] sm:$0xff] %vm216_vm0, %v282_v48  ;;  %v463_v20 = vmul.f32 %v1788_v10, %v1720_v8  ;;  %v1176_v21 = vadd.f32 %v1144_v35, %v1079_v57  ;;  %v884_v22 = vadd.f32 %v852_v3, %v787_v7  ;;  %v691_v24 = vadd.f32 %v659_v2, %v591_v9  ;;  %v1546_v2 = vld [vmem:[#allocation2 + $0x6a] sm:$0xff] }
  0x4b   : > { %315 = vst.msk [vmem:[#allocation2 + $0x139] sm:$0xff] %vm216_vm0, %v283_v56  ;;  %v756_v23 = vmul.f32 %v1809_v30, %v1746_v31  ;;  %v1080_v28 = vadd.f32 %v1048_v53, %v983_v0  ;;  %v853_v10 = vmul.f32 %v1821_v41, %v1753_v38  ;;  %v560_v33 = vmul.f32 %v1795_v17, %v1724_v11  ;;  %v1482_v53 = vld [vmem:[#allocation2 + $0x68] sm:$0xff] }
  0x4c   : > { %316 = vst.msk [vmem:[#allocation2 + $0x141] sm:$0xff] %vm216_vm0, %v284_v63  ;;  %v495_v32 = vadd.f32 %v463_v20, %v366_v12  ;;  %v984_v35 = vadd.f32 %v952_v4, %v884_v22  ;;  %v953_v37 = vmul.f32 %v1862_v19, %v1759_v45  ;;  %v367_v39 = vmul.f32 %v1797_v18, %v1718_v6 }
  0x4d   : > { %317 = vst.msk [vmem:[#allocation2 + $0x151] sm:$0xff] %vm216_vm0, %v285_v5  ;;  %v788_v36 = vadd.f32 %v756_v23, %v691_v24  ;;  %v1050_v42 = vmul.f32 %v1870_v25, %v1765_v51  ;;  %v660_v17 = vmul.f32 %v1825_v44, %v1740_v26  ;;  %v464_v46 = vmul.f32 %v1809_v30, %v1720_v8  ;;  %v1515_v24 = vld [vmem:[#allocation2 + $0x79] sm:$0xff] }
  0x4e   : > { %318 = vst.msk [vmem:[#allocation2 + $0x159] sm:$0xff] %vm216_vm0, %v286_v13  ;;  %v592_v43 = vadd.f32 %v560_v33, %v495_v32  ;;  %v1081_v18 = vadd.f32 %v1049_v15, %v984_v35  ;;  %v1147_v48 = vmul.f32 %v1776_v60, %v1876_v29  ;;  %v757_v49 = vmul.f32 %v1837_v58, %v1746_v31  ;;  %v1483_v13 = vld [vmem:[#allocation2 + $0x78] sm:$0xff] }
  0x4f   : > { %319 = vst.msk [vmem:[#allocation2 + $0x169] sm:$0xff] %vm216_vm0, %v287_v61  ;;  %v885_v47 = vadd.f32 %v853_v10, %v788_v36  ;;  %v1177_v30 = vadd.f32 %v1145_v1, %v1080_v28  ;;  %v496_v56 = vadd.f32 %v464_v46, %v367_v39  ;;  %v561_v57 = vmul.f32 %v1821_v41, %v1724_v11  ;;  %v1484_v36 = vld [vmem:[#allocation2 + $0x80] sm:$0xff] }
  0x50   : > { %320 = vst.msk [vmem:[#allocation2 + $0x171] sm:$0xff] %vm216_vm0, %v288_v27  ;;  %v692_v52 = vadd.f32 %v660_v17, %v592_v43  ;;  %v1178_v50 = vadd.f32 %v1146_v16, %v1081_v18  ;;  %v854_v62 = vmul.f32 %v1839_v54, %v1753_v38  ;;  %v368_v63 = vmul.f32 %v1825_v44, %v1718_v6 }
  0x51   : > { %321 = vst.msk [vmem:[#allocation2 + $0x181] sm:$0xff] %vm216_vm0, %v289_v34  ;;  %v985_v59 = vadd.f32 %v953_v37, %v885_v47  ;;  %v593_v1 = vadd.f32 %v561_v57, %v496_v56  ;;  %v661_v3 = vmul.f32 %v1862_v19, %v1740_v26  ;;  %v465_v41 = vmul.f32 %v1837_v58, %v1720_v8  ;;  %v1547_v34 = vld [vmem:[#allocation2 + $0x7a] sm:$0xff] }
  0x52   : > { %322 = vst.msk [vmem:[#allocation2 + $0x189] sm:$0xff] %vm216_vm0, %v290_v40  ;;  %v789_v0 = vadd.f32 %v757_v49, %v692_v52  ;;  %v954_v5 = vmul.f32 %v1482_v53, %v1759_v45  ;;  %v1051_v7 = vmul.f32 %v1514_v55, %v1765_v51  ;;  %v758_v44 = vmul.f32 %v1870_v25, %v1746_v31  ;;  %v1516_v37 = vld [vmem:[#allocation2 + $0x81] sm:$0xff] }
  0x53   : > { %1208 = vst.msk [vmem:[%s1900_s23] sm:$0xff] %vm216_vm0, %v1175_v14  ;;  %v1082_v4 = vadd.f32 %v1050_v42, %v985_v59  ;;  %v693_v12 = vadd.f32 %v661_v3, %v593_v1  ;;  %v497_v14 = vadd.f32 %v465_v41, %v368_v63  ;;  %v562_v58 = vmul.f32 %v1839_v54, %v1724_v11  ;;  %v1485_v59 = vld [vmem:[#allocation2 + $0x90] sm:$0xff] }
  0x54   : > { %1209 = vst.msk [vmem:[%s1900_s23 + $0x8] sm:$0xff] %vm216_vm0, %v1176_v21  ;;  %v886_v9 = vadd.f32 %v854_v62, %v789_v0  ;;  %v855_v16 = vmul.f32 %v1876_v29, %v1753_v38  ;;  %v662_v20 = vmul.f32 %v1482_v53, %v1740_v26  ;;  %v369_v61 = vmul.f32 %v1862_v19, %v1718_v6  ;;  %v1517_v0 = vld [vmem:[#allocation2 + $0x91] sm:$0xff] }
  0x55   : > { %1210 = vst.msk [vmem:[%s1900_s23 + $0x10] sm:$0xff] %vm216_vm0, %v1177_v30  ;;  %v1179_v15 = vadd.f32 %v1147_v48, %v1082_v4  ;;  %v790_v22 = vadd.f32 %v758_v44, %v693_v12  ;;  %v594_v23 = vadd.f32 %v562_v58, %v497_v14  ;;  %v466_v27 = vmul.f32 %v1870_v25, %v1720_v8  ;;  %v1549_v1 = vld [vmem:[#allocation2 + $0x92] sm:$0xff] }
  0x56   : > { %1211 = vst.msk [vmem:[%s1900_s23 + $0x18] sm:$0xff] %vm216_vm0, %v1178_v50  ;;  %v986_v21 = vadd.f32 %v954_v5, %v886_v9  ;;  %v1148_v54 = vmul.f32 %v1776_v60, %v1546_v2  ;;  %v955_v28 = vmul.f32 %v1483_v13, %v1759_v45  ;;  %v759_v10 = vmul.f32 %v1514_v55, %v1746_v31 }
  0x57   : > { %1212 = vst.msk [vmem:[%s1900_s23 + $0x20] sm:$0xff] %vm216_vm0, %v1179_v15  ;;  %v563_v32 = vmul.f32 %v1876_v29, %v1724_v11  ;;  %v887_v19 = vadd.f32 %v855_v16, %v790_v22  ;;  %v694_v35 = vadd.f32 %v662_v20, %v594_v23  ;;  %v498_v39 = vadd.f32 %v466_v27, %v369_v61  ;;  %v1548_v29 = vld [vmem:[#allocation2 + $0x82] sm:$0xff] }
  0x58   : > { %v1083_v33 = vadd.f32 %v1051_v7, %v986_v21  ;;  %v1052_v25 = vmul.f32 %v1515_v24, %v1765_v51  ;;  %v856_v40 = vmul.f32 %v1546_v2, %v1753_v38  ;;  %v663_v42 = vmul.f32 %v1483_v13, %v1740_v26  ;;  %v1518_v21 = vld [vmem:[#allocation2 + $0x99] sm:$0xff] }
  0x59   : > { %v370_v43 = vmul.f32 %v1482_v53, %v1718_v6  ;;  %v987_v46 = vadd.f32 %v955_v28, %v887_v19  ;;  %v791_v18 = vadd.f32 %v759_v10, %v694_v35  ;;  %v595_v47 = vadd.f32 %v563_v32, %v498_v39 }
  0x5a   : > { %v1180_v17 = vadd.f32 %v1148_v54, %v1083_v33  ;;  %v1149_v48 = vmul.f32 %v1776_v60, %v1547_v34  ;;  %v956_v49 = vmul.f32 %v1484_v36, %v1759_v45  ;;  %v1053_v30 = vmul.f32 %v1516_v37, %v1765_v51 }
  0x5b   : > { %v467_v52 = vmul.f32 %v1514_v55, %v1720_v8  ;;  %v1084_v56 = vadd.f32 %v1052_v25, %v987_v46  ;;  %v888_v57 = vadd.f32 %v856_v40, %v791_v18  ;;  %v695_v50 = vadd.f32 %v663_v42, %v595_v47  ;;  %v1550_v42 = vld [vmem:[#allocation2 + $0x9a] sm:$0xff] }
  0x5c   : > { %1213 = vst.msk [vmem:[%s1900_s23 + $0x28] sm:$0xff] %vm216_vm0, %v1180_v17  ;;  %v760_v53 = vmul.f32 %v1515_v24, %v1746_v31  ;;  %v1150_v62 = vmul.f32 %v1776_v60, %v1548_v29  ;;  %v857_v63 = vmul.f32 %v1547_v34, %v1753_v38  ;;  %v564_v41 = vmul.f32 %v1546_v2, %v1724_v11 }
  0x5d   : > { %v499_v3 = vadd.f32 %v467_v52, %v370_v43  ;;  %v1181_v4 = vadd.f32 %v1149_v48, %v1084_v56  ;;  %v988_v55 = vadd.f32 %v956_v49, %v888_v57  ;;  %v371_v7 = vmul.f32 %v1483_v13, %v1718_v6  ;;  %v1486_v13 = vld [vmem:[#allocation2 + $0x98] sm:$0xff]  ;;  %v1519_v52 = vld [vmem:[#allocation2 + $0xa9] sm:$0xff] }
  0x5e   : > { %v792_v5 = vadd.f32 %v760_v53, %v695_v50  ;;  %v957_v44 = vmul.f32 %v1485_v59, %v1759_v45  ;;  %v664_v12 = vmul.f32 %v1484_v36, %v1740_v26  ;;  %v468_v14 = vmul.f32 %v1515_v24, %v1720_v8 }
  0x5f   : > { %v596_v9 = vadd.f32 %v564_v41, %v499_v3  ;;  %1214 = vst.msk [vmem:[%s1900_s23 + $0x30] sm:$0xff] %vm216_vm0, %v1181_v4  ;;  %v1085_v58 = vadd.f32 %v1053_v30, %v988_v55  ;;  %v1054_v16 = vmul.f32 %v1517_v0, %v1765_v51  ;;  %v1151_v2 = vmul.f32 %v1776_v60, %v1549_v1  ;;  %v1551_v41 = vld [vmem:[#allocation2 + $0xaa] sm:$0xff] }
  0x60   : > { %v889_v15 = vadd.f32 %v857_v63, %v792_v5  ;;  %v761_v61 = vmul.f32 %v1516_v37, %v1746_v31  ;;  %v500_v22 = vadd.f32 %v468_v14, %v371_v7  ;;  %v565_v23 = vmul.f32 %v1547_v34, %v1724_v11  ;;  %v1488_v4 = vld [vmem:[#allocation2 + $0xb0] sm:$0xff] }
  0x61   : > { %v696_v20 = vadd.f32 %v664_v12, %v596_v9  ;;  %v1182_v27 = vadd.f32 %v1150_v62, %v1085_v58  ;;  %v858_v24 = vmul.f32 %v1548_v29, %v1753_v38  ;;  %v372_v28 = vmul.f32 %v1484_v36, %v1718_v6  ;;  %v1487_v36 = vld [vmem:[#allocation2 + $0xa8] sm:$0xff]  ;;  %v1520_v55 = vld [vmem:[#allocation2 + $0xb1] sm:$0xff] }
  0x62   : > { %v989_v54 = vadd.f32 %v957_v44, %v889_v15  ;;  %v597_v32 = vadd.f32 %v565_v23, %v500_v22  ;;  %v665_v33 = vmul.f32 %v1485_v59, %v1740_v26  ;;  %v469_v19 = vmul.f32 %v1516_v37, %v1720_v8 }
  0x63   : > { %v793_v10 = vadd.f32 %v761_v61, %v696_v20  ;;  %1215 = vst.msk [vmem:[%s1900_s23 + $0x38] sm:$0xff] %vm216_vm0, %v1182_v27  ;;  %v958_v39 = vmul.f32 %v1486_v13, %v1759_v45  ;;  %v1055_v25 = vmul.f32 %v1518_v21, %v1765_v51  ;;  %v762_v34 = vmul.f32 %v1517_v0, %v1746_v31 }
  0x64   : > { %v1086_v35 = vadd.f32 %v1054_v16, %v989_v54  ;;  %v697_v43 = vadd.f32 %v665_v33, %v597_v32  ;;  %v501_v17 = vadd.f32 %v469_v19, %v372_v28  ;;  %v566_v46 = vmul.f32 %v1548_v29, %v1724_v11  ;;  %v1489_v54 = vld [vmem:[#allocation2 + $0xc0] sm:$0xff] }
  0x65   : > { %v890_v40 = vadd.f32 %v858_v24, %v793_v10  ;;  %v859_v37 = vmul.f32 %v1549_v1, %v1753_v38  ;;  %v666_v47 = vmul.f32 %v1486_v13, %v1740_v26  ;;  %v373_v48 = vmul.f32 %v1485_v59, %v1718_v6  ;;  %v1521_v10 = vld [vmem:[#allocation2 + $0xc1] sm:$0xff] }
  0x66   : > { %v1183_v18 = vadd.f32 %v1151_v2, %v1086_v35  ;;  %v794_v30 = vadd.f32 %v762_v34, %v697_v43  ;;  %v598_v56 = vadd.f32 %v566_v46, %v501_v17  ;;  %v470_v57 = vmul.f32 %v1517_v0, %v1720_v8  ;;  %v1553_v32 = vld [vmem:[#allocation2 + $0xc2] sm:$0xff] }
  0x67   : > { %v990_v49 = vadd.f32 %v958_v39, %v890_v40  ;;  %v1152_v50 = vmul.f32 %v1776_v60, %v1550_v42  ;;  %v959_v53 = vmul.f32 %v1487_v36, %v1759_v45  ;;  %v763_v29 = vmul.f32 %v1518_v21, %v1746_v31 }
  0x68   : > { %1216 = vst.msk [vmem:[%s1900_s23 + $0x40] sm:$0xff] %vm216_vm0, %v1183_v18  ;;  %v567_v62 = vmul.f32 %v1549_v1, %v1724_v11  ;;  %v891_v3 = vadd.f32 %v859_v37, %v794_v30  ;;  %v698_v59 = vadd.f32 %v666_v47, %v598_v56  ;;  %v502_v5 = vadd.f32 %v470_v57, %v373_v48  ;;  %v1552_v1 = vld [vmem:[#allocation2 + $0xb2] sm:$0xff] }
  0x69   : > { %v1087_v63 = vadd.f32 %v1055_v25, %v990_v49  ;;  %v1056_v0 = vmul.f32 %v1519_v52, %v1765_v51  ;;  %v860_v7 = vmul.f32 %v1550_v42, %v1753_v38  ;;  %v667_v44 = vmul.f32 %v1487_v36, %v1740_v26  ;;  %v1522_v49 = vld [vmem:[#allocation2 + $0xc9] sm:$0xff] }
  0x6a   : > { %v374_v9 = vmul.f32 %v1486_v13, %v1718_v6  ;;  %v991_v14 = vadd.f32 %v959_v53, %v891_v3  ;;  %v795_v58 = vadd.f32 %v763_v29, %v698_v59  ;;  %v599_v15 = vadd.f32 %v567_v62, %v502_v5 }
  0x6b   : > { %v1184_v12 = vadd.f32 %v1152_v50, %v1087_v63  ;;  %v1153_v16 = vmul.f32 %v1776_v60, %v1551_v41  ;;  %v960_v2 = vmul.f32 %v1488_v4, %v1759_v45  ;;  %v1057_v20 = vmul.f32 %v1520_v55, %v1765_v51 }
  0x6c   : > { %v471_v61 = vmul.f32 %v1518_v21, %v1720_v8  ;;  %v1088_v22 = vadd.f32 %v1056_v0, %v991_v14  ;;  %v892_v23 = vadd.f32 %v860_v7, %v795_v58  ;;  %v699_v27 = vadd.f32 %v667_v44, %v599_v15  ;;  %v1554_v44 = vld [vmem:[#allocation2 + $0xca] sm:$0xff] }
  0x6d   : > { %1217 = vst.msk [vmem:[%s1900_s23 + $0x48] sm:$0xff] %vm216_vm0, %v1184_v12  ;;  %v764_v13 = vmul.f32 %v1519_v52, %v1746_v31  ;;  %v1154_v24 = vmul.f32 %v1776_v60, %v1552_v1  ;;  %v861_v28 = vmul.f32 %v1551_v41, %v1753_v38  ;;  %v568_v19 = vmul.f32 %v1550_v42, %v1724_v11 }
  0x6e   : > { %v503_v33 = vadd.f32 %v471_v61, %v374_v9  ;;  %v1185_v35 = vadd.f32 %v1153_v16, %v1088_v22  ;;  %v992_v21 = vadd.f32 %v960_v2, %v892_v23  ;;  %v375_v25 = vmul.f32 %v1487_v36, %v1718_v6  ;;  %v1490_v36 = vld [vmem:[#allocation2 + $0xc8] sm:$0xff]  ;;  %v1523_v61 = vld [vmem:[#allocation2 + $0xd9] sm:$0xff] }
  0x6f   : > { %v796_v39 = vadd.f32 %v764_v13, %v699_v27  ;;  %v961_v34 = vmul.f32 %v1489_v54, %v1759_v45  ;;  %v668_v43 = vmul.f32 %v1488_v4, %v1740_v26  ;;  %v472_v17 = vmul.f32 %v1519_v52, %v1720_v8 }
  0x70   : > { %v600_v40 = vadd.f32 %v568_v19, %v503_v33  ;;  %1218 = vst.msk [vmem:[%s1900_s23 + $0x50] sm:$0xff] %vm216_vm0, %v1185_v35  ;;  %v1089_v46 = vadd.f32 %v1057_v20, %v992_v21  ;;  %v1058_v37 = vmul.f32 %v1521_v10, %v1765_v51  ;;  %v1155_v42 = vmul.f32 %v1776_v60, %v1553_v32  ;;  %v1555_v19 = vld [vmem:[#allocation2 + $0xda] sm:$0xff] }
  0x71   : > { %v893_v18 = vadd.f32 %v861_v28, %v796_v39  ;;  %v765_v48 = vmul.f32 %v1520_v55, %v1746_v31  ;;  %v504_v30 = vadd.f32 %v472_v17, %v375_v25  ;;  %v569_v56 = vmul.f32 %v1551_v41, %v1724_v11  ;;  %v1492_v35 = vld [vmem:[#allocation2 + $0xe0] sm:$0xff] }
  0x72   : > { %v700_v47 = vadd.f32 %v668_v43, %v600_v40  ;;  %v1186_v57 = vadd.f32 %v1154_v24, %v1089_v46  ;;  %v862_v52 = vmul.f32 %v1552_v1, %v1753_v38  ;;  %v376_v53 = vmul.f32 %v1488_v4, %v1718_v6  ;;  %v1491_v4 = vld [vmem:[#allocation2 + $0xd8] sm:$0xff]  ;;  %v1524_v21 = vld [vmem:[#allocation2 + $0xe1] sm:$0xff] }
  0x73   : > { %v993_v50 = vadd.f32 %v961_v34, %v893_v18  ;;  %v601_v62 = vadd.f32 %v569_v56, %v504_v30  ;;  %v669_v63 = vmul.f32 %v1489_v54, %v1740_v26  ;;  %v473_v3 = vmul.f32 %v1520_v55, %v1720_v8 }
  0x74   : > { %v797_v29 = vadd.f32 %v765_v48, %v700_v47  ;;  %1219 = vst.msk [vmem:[%s1900_s23 + $0x58] sm:$0xff] %vm216_vm0, %v1186_v57  ;;  %v962_v5 = vmul.f32 %v1490_v36, %v1759_v45  ;;  %v1059_v0 = vmul.f32 %v1522_v49, %v1765_v51  ;;  %v766_v41 = vmul.f32 %v1521_v10, %v1746_v31 }
  0x75   : > { %v1090_v59 = vadd.f32 %v1058_v37, %v993_v50  ;;  %v701_v9 = vadd.f32 %v669_v63, %v601_v62  ;;  %v505_v12 = vadd.f32 %v473_v3, %v376_v53  ;;  %v570_v14 = vmul.f32 %v1552_v1, %v1724_v11  ;;  %v1493_v50 = vld [vmem:[#allocation2 + $0xf0] sm:$0xff] }
  0x76   : > { %v894_v7 = vadd.f32 %v862_v52, %v797_v29  ;;  %v863_v55 = vmul.f32 %v1553_v32, %v1753_v38  ;;  %v670_v15 = vmul.f32 %v1490_v36, %v1740_v26  ;;  %v377_v16 = vmul.f32 %v1489_v54, %v1718_v6  ;;  %v1525_v29 = vld [vmem:[#allocation2 + $0xf1] sm:$0xff] }
  0x77   : > { %v1187_v58 = vadd.f32 %v1155_v42, %v1090_v59  ;;  %v798_v20 = vadd.f32 %v766_v41, %v701_v9  ;;  %v602_v22 = vadd.f32 %v570_v14, %v505_v12  ;;  %v474_v23 = vmul.f32 %v1521_v10, %v1720_v8  ;;  %v1557_v62 = vld [vmem:[#allocation2 + $0xf2] sm:$0xff] }
  0x78   : > { %v994_v2 = vadd.f32 %v962_v5, %v894_v7  ;;  %v1156_v27 = vmul.f32 %v1776_v60, %v1554_v44  ;;  %v963_v13 = vmul.f32 %v1491_v4, %v1759_v45  ;;  %v767_v1 = vmul.f32 %v1522_v49, %v1746_v31 }
  0x79   : > { %1220 = vst.msk [vmem:[%s1900_s23 + $0x60] sm:$0xff] %vm216_vm0, %v1187_v58  ;;  %v571_v24 = vmul.f32 %v1553_v32, %v1724_v11  ;;  %v895_v33 = vadd.f32 %v863_v55, %v798_v20  ;;  %v702_v54 = vadd.f32 %v670_v15, %v602_v22  ;;  %v506_v39 = vadd.f32 %v474_v23, %v377_v16  ;;  %v1556_v32 = vld [vmem:[#allocation2 + $0xe2] sm:$0xff] }
  0x7a   : > { %v1091_v28 = vadd.f32 %v1059_v0, %v994_v2  ;;  %v1060_v10 = vmul.f32 %v1523_v61, %v1765_v51  ;;  %v864_v25 = vmul.f32 %v1554_v44, %v1753_v38  ;;  %v671_v34 = vmul.f32 %v1491_v4, %v1740_v26  ;;  %v1526_v2 = vld [vmem:[#allocation2 + $0xf9] sm:$0xff] }
  0x7b   : > { %v378_v40 = vmul.f32 %v1490_v36, %v1718_v6  ;;  %v995_v17 = vadd.f32 %v963_v13, %v895_v33  ;;  %v799_v46 = vadd.f32 %v767_v1, %v702_v54  ;;  %v603_v18 = vadd.f32 %v571_v24, %v506_v39 }
  0x7c   : > { %v1188_v43 = vadd.f32 %v1156_v27, %v1091_v28  ;;  %v1157_v37 = vmul.f32 %v1776_v60, %v1555_v19  ;;  %v964_v42 = vmul.f32 %v1492_v35, %v1759_v45  ;;  %v1061_v47 = vmul.f32 %v1524_v21, %v1765_v51 }
  0x7d   : > { %v475_v48 = vmul.f32 %v1522_v49, %v1720_v8  ;;  %v1092_v30 = vadd.f32 %v1060_v10, %v995_v17  ;;  %v896_v56 = vadd.f32 %v864_v25, %v799_v46  ;;  %v703_v57 = vadd.f32 %v671_v34, %v603_v18  ;;  %v1558_v34 = vld [vmem:[#allocation2 + $0xfa] sm:$0xff] }
  0x7e   : > { %1221 = vst.msk [vmem:[%s1900_s23 + $0x68] sm:$0xff] %vm216_vm0, %v1188_v43  ;;  %v768_v36 = vmul.f32 %v1523_v61, %v1746_v31  ;;  %v1158_v52 = vmul.f32 %v1776_v60, %v1556_v32  ;;  %v865_v53 = vmul.f32 %v1555_v19, %v1753_v38  ;;  %v572_v3 = vmul.f32 %v1554_v44, %v1724_v11 }
  0x7f   : > { %v507_v63 = vadd.f32 %v475_v48, %v378_v40  ;;  %v1189_v59 = vadd.f32 %v1157_v37, %v1092_v30  ;;  %v996_v49 = vadd.f32 %v964_v42, %v896_v56  ;;  %v379_v0 = vmul.f32 %v1491_v4, %v1718_v6  ;;  %v1494_v4 = vld [vmem:[#allocation2 + $0xf8] sm:$0xff]  ;;  %v1527_v48 = vld [vmem:[#allocation2 + $0x109] sm:$0xff] }
  0x80   : > { %v800_v5 = vadd.f32 %v768_v36, %v703_v57  ;;  %v965_v41 = vmul.f32 %v1493_v50, %v1759_v45  ;;  %v672_v9 = vmul.f32 %v1492_v35, %v1740_v26  ;;  %v476_v12 = vmul.f32 %v1523_v61, %v1720_v8 }
  0x81   : > { %v604_v7 = vadd.f32 %v572_v3, %v507_v63  ;;  %1222 = vst.msk [vmem:[%s1900_s23 + $0x70] sm:$0xff] %vm216_vm0, %v1189_v59  ;;  %v1093_v14 = vadd.f32 %v1061_v47, %v996_v49  ;;  %v1062_v55 = vmul.f32 %v1525_v29, %v1765_v51  ;;  %v1159_v44 = vmul.f32 %v1776_v60, %v1557_v62  ;;  %v1559_v3 = vld [vmem:[#allocation2 + $0x10a] sm:$0xff] }
  0x82   : > { %v897_v58 = vadd.f32 %v865_v53, %v800_v5  ;;  %v769_v16 = vmul.f32 %v1524_v21, %v1746_v31  ;;  %v508_v20 = vadd.f32 %v476_v12, %v379_v0  ;;  %v573_v22 = vmul.f32 %v1555_v19, %v1724_v11  ;;  %v1496_v59 = vld [vmem:[#allocation2 + $0x110] sm:$0xff] }
  0x83   : > { %v704_v15 = vadd.f32 %v672_v9, %v604_v7  ;;  %v1190_v23 = vadd.f32 %v1158_v52, %v1093_v14  ;;  %v866_v61 = vmul.f32 %v1556_v32, %v1753_v38  ;;  %v380_v13 = vmul.f32 %v1492_v35, %v1718_v6  ;;  %v1495_v35 = vld [vmem:[#allocation2 + $0x108] sm:$0xff]  ;;  %v1528_v49 = vld [vmem:[#allocation2 + $0x111] sm:$0xff] }
  0x84   : > { %v997_v27 = vadd.f32 %v965_v41, %v897_v58  ;;  %v605_v24 = vadd.f32 %v573_v22, %v508_v20  ;;  %v673_v28 = vmul.f32 %v1493_v50, %v1740_v26  ;;  %v477_v33 = vmul.f32 %v1524_v21, %v1720_v8 }
  0x85   : > { %v801_v1 = vadd.f32 %v769_v16, %v704_v15  ;;  %1223 = vst.msk [vmem:[%s1900_s23 + $0x78] sm:$0xff] %vm216_vm0, %v1190_v23  ;;  %v966_v39 = vmul.f32 %v1494_v4, %v1759_v45  ;;  %v1063_v10 = vmul.f32 %v1526_v2, %v1765_v51  ;;  %v770_v19 = vmul.f32 %v1525_v29, %v1746_v31 }
  0x86   : > { %v1094_v54 = vadd.f32 %v1062_v55, %v997_v27  ;;  %v705_v40 = vadd.f32 %v673_v28, %v605_v24  ;;  %v509_v43 = vadd.f32 %v477_v33, %v380_v13  ;;  %v574_v17 = vmul.f32 %v1556_v32, %v1724_v11  ;;  %v1497_v27 = vld [vmem:[#allocation2 + $0x120] sm:$0xff] }
  0x87   : > { %v898_v25 = vadd.f32 %v866_v61, %v801_v1  ;;  %v867_v21 = vmul.f32 %v1557_v62, %v1753_v38  ;;  %v674_v18 = vmul.f32 %v1494_v4, %v1740_v26  ;;  %v381_v37 = vmul.f32 %v1493_v50, %v1718_v6  ;;  %v1529_v1 = vld [vmem:[#allocation2 + $0x121] sm:$0xff] }
  0x88   : > { %v1191_v46 = vadd.f32 %v1159_v44, %v1094_v54  ;;  %v802_v47 = vadd.f32 %v770_v19, %v705_v40  ;;  %v606_v30 = vadd.f32 %v574_v17, %v509_v43  ;;  %v478_v56 = vmul.f32 %v1525_v29, %v1720_v8  ;;  %v1561_v24 = vld [vmem:[#allocation2 + $0x122] sm:$0xff] }
  0x89   : > { %v998_v42 = vadd.f32 %v966_v39, %v898_v25  ;;  %v1160_v57 = vmul.f32 %v1776_v60, %v1558_v34  ;;  %v967_v36 = vmul.f32 %v1495_v35, %v1759_v45  ;;  %v771_v32 = vmul.f32 %v1526_v2, %v1746_v31 }
  0x8a   : > { %1224 = vst.msk [vmem:[%s1900_s23 + $0x80] sm:$0xff] %vm216_vm0, %v1191_v46  ;;  %v575_v52 = vmul.f32 %v1557_v62, %v1724_v11  ;;  %v899_v63 = vadd.f32 %v867_v21, %v802_v47  ;;  %v706_v50 = vadd.f32 %v674_v18, %v606_v30  ;;  %v510_v5 = vadd.f32 %v478_v56, %v381_v37  ;;  %v1560_v62 = vld [vmem:[#allocation2 + $0x112] sm:$0xff] }
  0x8b   : > { %v1095_v53 = vadd.f32 %v1063_v10, %v998_v42  ;;  %v1064_v29 = vmul.f32 %v1527_v48, %v1765_v51  ;;  %v868_v0 = vmul.f32 %v1558_v34, %v1753_v38  ;;  %v675_v41 = vmul.f32 %v1495_v35, %v1740_v26  ;;  %v1530_v42 = vld [vmem:[#allocation2 + $0x129] sm:$0xff] }
  0x8c   : > { %v382_v7 = vmul.f32 %v1494_v4, %v1718_v6  ;;  %v999_v12 = vadd.f32 %v967_v36, %v899_v63  ;;  %v803_v14 = vadd.f32 %v771_v32, %v706_v50  ;;  %v607_v58 = vadd.f32 %v575_v52, %v510_v5 }
  0x8d   : > { %v1192_v9 = vadd.f32 %v1160_v57, %v1095_v53  ;;  %v1161_v55 = vmul.f32 %v1776_v60, %v1559_v3  ;;  %v968_v44 = vmul.f32 %v1496_v59, %v1759_v45  ;;  %v1065_v15 = vmul.f32 %v1528_v49, %v1765_v51 }
  0x8e   : > { %v479_v16 = vmul.f32 %v1526_v2, %v1720_v8  ;;  %v1096_v20 = vadd.f32 %v1064_v29, %v999_v12  ;;  %v900_v22 = vadd.f32 %v868_v0, %v803_v14  ;;  %v707_v23 = vadd.f32 %v675_v41, %v607_v58  ;;  %v1562_v41 = vld [vmem:[#allocation2 + $0x12a] sm:$0xff] }
  0x8f   : > { %1225 = vst.msk [vmem:[%s1900_s23 + $0x88] sm:$0xff] %vm216_vm0, %v1192_v9  ;;  %v772_v4 = vmul.f32 %v1527_v48, %v1746_v31  ;;  %v1162_v61 = vmul.f32 %v1776_v60, %v1560_v62  ;;  %v869_v13 = vmul.f32 %v1559_v3, %v1753_v38  ;;  %v576_v33 = vmul.f32 %v1558_v34, %v1724_v11 }
  0x90   : > { %v511_v28 = vadd.f32 %v479_v16, %v382_v7  ;;  %v1193_v54 = vadd.f32 %v1161_v55, %v1096_v20  ;;  %v1000_v2 = vadd.f32 %v968_v44, %v900_v22  ;;  %v383_v10 = vmul.f32 %v1495_v35, %v1718_v6  ;;  %v1498_v35 = vld [vmem:[#allocation2 + $0x128] sm:$0xff]  ;;  %v1531_v16 = vld [vmem:[#allocation2 + $0x139] sm:$0xff] }
  0x91   : > { %v804_v39 = vadd.f32 %v772_v4, %v707_v23  ;;  %v969_v19 = vmul.f32 %v1497_v27, %v1759_v45  ;;  %v676_v40 = vmul.f32 %v1496_v59, %v1740_v26  ;;  %v480_v43 = vmul.f32 %v1527_v48, %v1720_v8 }
  0x92   : > { %v608_v25 = vadd.f32 %v576_v33, %v511_v28  ;;  %1226 = vst.msk [vmem:[%s1900_s23 + $0x90] sm:$0xff] %vm216_vm0, %v1193_v54  ;;  %v1097_v17 = vadd.f32 %v1065_v15, %v1000_v2  ;;  %v1066_v21 = vmul.f32 %v1529_v1, %v1765_v51  ;;  %v1163_v34 = vmul.f32 %v1776_v60, %v1561_v24  ;;  %v1563_v33 = vld [vmem:[#allocation2 + $0x13a] sm:$0xff] }
  0x93   : > { %v901_v46 = vadd.f32 %v869_v13, %v804_v39  ;;  %v773_v37 = vmul.f32 %v1528_v49, %v1746_v31  ;;  %v512_v47 = vadd.f32 %v480_v43, %v383_v10  ;;  %v577_v30 = vmul.f32 %v1559_v3, %v1724_v11  ;;  %v1500_v54 = vld [vmem:[#allocation2 + $0x140] sm:$0xff] }
  0x94   : > { %v708_v18 = vadd.f32 %v676_v40, %v608_v25  ;;  %v1194_v56 = vadd.f32 %v1162_v61, %v1097_v17  ;;  %v870_v48 = vmul.f32 %v1560_v62, %v1753_v38  ;;  %v384_v36 = vmul.f32 %v1496_v59, %v1718_v6  ;;  %v1499_v59 = vld [vmem:[#allocation2 + $0x138] sm:$0xff]  ;;  %v1532_v2 = vld [vmem:[#allocation2 + $0x141] sm:$0xff] }
  0x95   : > { %v1001_v57 = vadd.f32 %v969_v19, %v901_v46  ;;  %v609_v52 = vadd.f32 %v577_v30, %v512_v47  ;;  %v677_v53 = vmul.f32 %v1497_v27, %v1740_v26  ;;  %v481_v63 = vmul.f32 %v1528_v49, %v1720_v8  ;;  %v2129_v46 = vld [vmem:[%s2234_s1 + $0x8] ss:$0 sm:$0xff] }
  0x96   : > { %v805_v32 = vadd.f32 %v773_v37, %v708_v18  ;;  %1227 = vst.msk [vmem:[%s1900_s23 + $0x98] sm:$0xff] %vm216_vm0, %v1194_v56  ;;  %v970_v5 = vmul.f32 %v1498_v35, %v1759_v45  ;;  %v1067_v29 = vmul.f32 %v1530_v42, %v1765_v51  ;;  %v774_v3 = vmul.f32 %v1529_v1, %v1746_v31 }
  0x97   : > { %v1098_v50 = vadd.f32 %v1066_v21, %v1001_v57  ;;  %v709_v7 = vadd.f32 %v677_v53, %v609_v52  ;;  %v513_v9 = vadd.f32 %v481_v63, %v384_v36  ;;  %v578_v12 = vmul.f32 %v1560_v62, %v1724_v11  ;;  %v1501_v57 = vld [vmem:[#allocation2 + $0x150] sm:$0xff] }
  0x98   : > { %v902_v0 = vadd.f32 %v870_v48, %v805_v32  ;;  %v871_v49 = vmul.f32 %v1561_v24, %v1753_v38  ;;  %v678_v58 = vmul.f32 %v1498_v35, %v1740_v26  ;;  %v385_v55 = vmul.f32 %v1497_v27, %v1718_v6  ;;  %v1533_v32 = vld [vmem:[#allocation2 + $0x151] sm:$0xff] }
  0x99   : > { %v1195_v14 = vadd.f32 %v1163_v34, %v1098_v50  ;;  %v806_v15 = vadd.f32 %v774_v3, %v709_v7  ;;  %v610_v20 = vadd.f32 %v578_v12, %v513_v9  ;;  %v482_v22 = vmul.f32 %v1529_v1, %v1720_v8  ;;  %v1565_v52 = vld [vmem:[#allocation2 + $0x152] sm:$0xff] }
  0x9a   : > { %v1002_v44 = vadd.f32 %v970_v5, %v902_v0  ;;  %v1164_v23 = vmul.f32 %v1776_v60, %v1562_v41  ;;  %v971_v4 = vmul.f32 %v1499_v59, %v1759_v45  ;;  %v775_v62 = vmul.f32 %v1530_v42, %v1746_v31 }
  0x9b   : > { %1228 = vst.msk [vmem:[%s1900_s23 + $0xa0] sm:$0xff] %vm216_vm0, %v1195_v14  ;;  %v579_v61 = vmul.f32 %v1561_v24, %v1724_v11  ;;  %v903_v28 = vadd.f32 %v871_v49, %v806_v15  ;;  %v710_v27 = vadd.f32 %v678_v58, %v610_v20  ;;  %v514_v39 = vadd.f32 %v482_v22, %v385_v55  ;;  %v1564_v24 = vld [vmem:[#allocation2 + $0x142] sm:$0xff] }
  0x9c   : > { %v1099_v13 = vadd.f32 %v1067_v29, %v1002_v44  ;;  %v1068_v1 = vmul.f32 %v1531_v16, %v1765_v51  ;;  %v872_v10 = vmul.f32 %v1562_v41, %v1753_v38  ;;  %v679_v60 = vmul.f32 %v1499_v59, %v1740_v26  ;;  %v1534_v44 = vld [vmem:[#allocation2 + $0x159] sm:$0xff] }
  0x9d   : > { %v386_v19 = vmul.f32 %v1498_v35, %v1718_v6  ;;  %v1003_v40 = vadd.f32 %v971_v4, %v903_v28  ;;  %v807_v43 = vadd.f32 %v775_v62, %v710_v27  ;;  %v611_v17 = vadd.f32 %v579_v61, %v514_v39 }
  0x9e   : > { %v1196_v25 = vadd.f32 %v1164_v23, %v1099_v13  ;;  %v1165_v21 = vmul.f32 %v2129_v46, %v1563_v33  ;;  %v972_v34 = vmul.f32 %v1500_v54, %v1759_v45  ;;  %v1069_v18 = vmul.f32 %v1532_v2, %v1765_v51 }
  0x9f   : > { %v483_v37 = vmul.f32 %v1530_v42, %v1720_v8  ;;  %v1100_v35 = vadd.f32 %v1068_v1, %v1003_v40  ;;  %v904_v47 = vadd.f32 %v872_v10, %v807_v43  ;;  %v711_v30 = vadd.f32 %v679_v60, %v611_v17  ;;  %v1566_v60 = vld [vmem:[#allocation2 + $0x15a] sm:$0xff] }
  0xa0   : > { %1229 = vst.msk [vmem:[%s1900_s23 + $0xa8] sm:$0xff] %vm216_vm0, %v1196_v25  ;;  %v776_v56 = vmul.f32 %v1531_v16, %v1746_v31  ;;  %v1166_v48 = vmul.f32 %v2129_v46, %v1564_v24  ;;  %v873_v36 = vmul.f32 %v1563_v33, %v1753_v38  ;;  %v580_v63 = vmul.f32 %v1562_v41, %v1724_v11 }
  0xa1   : > { %v515_v53 = vadd.f32 %v483_v37, %v386_v19  ;;  %v1197_v50 = vadd.f32 %v1165_v21, %v1100_v35  ;;  %v1004_v42 = vadd.f32 %v972_v34, %v904_v47  ;;  %v387_v29 = vmul.f32 %v1499_v59, %v1718_v6  ;;  %v1502_v59 = vld [vmem:[#allocation2 + $0x158] sm:$0xff]  ;;  %v1535_v37 = vld [vmem:[#allocation2 + $0x169] sm:$0xff] }
  0xa2   : > { %v808_v5 = vadd.f32 %v776_v56, %v711_v30  ;;  %v973_v3 = vmul.f32 %v1501_v57, %v1759_v45  ;;  %v680_v7 = vmul.f32 %v1500_v54, %v1740_v26  ;;  %v484_v9 = vmul.f32 %v1531_v16, %v1720_v8 }
  0xa3   : > { %v612_v0 = vadd.f32 %v580_v63, %v515_v53  ;;  %1230 = vst.msk [vmem:[%s1900_s23 + $0xb0] sm:$0xff] %vm216_vm0, %v1197_v50  ;;  %v1101_v12 = vadd.f32 %v1069_v18, %v1004_v42  ;;  %v1070_v49 = vmul.f32 %v1533_v32, %v1765_v51  ;;  %v1167_v41 = vmul.f32 %v2129_v46, %v1565_v52  ;;  %v1567_v63 = vld [vmem:[#allocation2 + $0x16a] sm:$0xff] }
  0xa4   : > { %v905_v14 = vadd.f32 %v873_v36, %v808_v5  ;;  %v777_v55 = vmul.f32 %v1532_v2, %v1746_v31  ;;  %v516_v15 = vadd.f32 %v484_v9, %v387_v29  ;;  %v581_v20 = vmul.f32 %v1563_v33, %v1724_v11  ;;  %v1504_v50 = vld [vmem:[#allocation2 + $0x170] sm:$0xff] }
  0xa5   : > { %v712_v58 = vadd.f32 %v680_v7, %v612_v0  ;;  %v1198_v22 = vadd.f32 %v1166_v48, %v1101_v12  ;;  %v874_v16 = vmul.f32 %v1564_v24, %v1753_v38  ;;  %v388_v4 = vmul.f32 %v1500_v54, %v1718_v6  ;;  %v1503_v54 = vld [vmem:[#allocation2 + $0x168] sm:$0xff]  ;;  %v1536_v42 = vld [vmem:[#allocation2 + $0x171] sm:$0xff] }
  0xa6   : > { %v1005_v23 = vadd.f32 %v973_v3, %v905_v14  ;;  %v613_v61 = vadd.f32 %v581_v20, %v516_v15  ;;  %v681_v13 = vmul.f32 %v1501_v57, %v1740_v26  ;;  %v485_v28 = vmul.f32 %v1532_v2, %v1720_v8 }
  0xa7   : > { %v809_v62 = vadd.f32 %v777_v55, %v712_v58  ;;  %1231 = vst.msk [vmem:[%s1900_s23 + $0xb8] sm:$0xff] %vm216_vm0, %v1198_v22  ;;  %v974_v39 = vmul.f32 %v1502_v59, %v1759_v45  ;;  %v1071_v1 = vmul.f32 %v1534_v44, %v1765_v51  ;;  %v778_v33 = vmul.f32 %v1533_v32, %v1746_v31 }
  0xa8   : > { %v1102_v27 = vadd.f32 %v1070_v49, %v1005_v23  ;;  %v713_v19 = vadd.f32 %v681_v13, %v613_v61  ;;  %v517_v25 = vadd.f32 %v485_v28, %v388_v4  ;;  %v582_v40 = vmul.f32 %v1564_v24, %v1724_v11  ;;  %v1505_v23 = vld [vmem:[#allocation2 + $0x180] sm:$0xff] }
  0xa9   : > { %v906_v10 = vadd.f32 %v874_v16, %v809_v62  ;;  %v875_v2 = vmul.f32 %v1565_v52, %v1753_v38  ;;  %v682_v17 = vmul.f32 %v1502_v59, %v1740_v26  ;;  %v389_v21 = vmul.f32 %v1501_v57, %v1718_v6  ;;  %v1537_v62 = vld [vmem:[#allocation2 + $0x181] sm:$0xff] }
  0xaa   : > { %v1199_v43 = vadd.f32 %v1167_v41, %v1102_v27  ;;  %v810_v18 = vadd.f32 %v778_v33, %v713_v19  ;;  %v614_v35 = vadd.f32 %v582_v40, %v517_v25  ;;  %v486_v47 = vmul.f32 %v1533_v32, %v1720_v8  ;;  %v1569_v33 = vld [vmem:[#allocation2 + $0x182] sm:$0xff] }
  0xab   : > { %v1006_v34 = vadd.f32 %v974_v39, %v906_v10  ;;  %v1168_v30 = vmul.f32 %v2129_v46, %v1566_v60  ;;  %v975_v56 = vmul.f32 %v1503_v54, %v1759_v45  ;;  %v779_v24 = vmul.f32 %v1534_v44, %v1746_v31 }
  0xac   : > { %1232 = vst.msk [vmem:[%s1900_s23 + $0xc0] sm:$0xff] %vm216_vm0, %v1199_v43  ;;  %v583_v48 = vmul.f32 %v1565_v52, %v1724_v11  ;;  %v907_v53 = vadd.f32 %v875_v2, %v810_v18  ;;  %v714_v57 = vadd.f32 %v682_v17, %v614_v35  ;;  %v518_v5 = vadd.f32 %v486_v47, %v389_v21  ;;  %v1568_v52 = vld [vmem:[#allocation2 + $0x172] sm:$0xff]  ;;  %v1506_v21 = vld [vmem:[#allocation2 + $0x188] sm:$0xff] }
  0xad   : > { %v1103_v36 = vadd.f32 %v1071_v1, %v1006_v34  ;;  %v1072_v32 = vmul.f32 %v1535_v37, %v1765_v51  ;;  %v876_v29 = vmul.f32 %v1566_v60, %v1753_v38  ;;  %v683_v3 = vmul.f32 %v1503_v54, %v1740_v26 }
  0xae   : > { %v390_v0 = vmul.f32 %v1502_v59, %v1718_v6  ;;  %v1007_v9 = vadd.f32 %v975_v56, %v907_v53  ;;  %v811_v12 = vadd.f32 %v779_v24, %v714_v57  ;;  %v615_v14 = vadd.f32 %v583_v48, %v518_v5  ;;  %v1538_v48 = vld [vmem:[#allocation2 + $0x189] sm:$0xff] }
  0xaf   : > { %v1200_v7 = vadd.f32 %v1168_v30, %v1103_v36  ;;  %v1169_v49 = vmul.f32 %v2129_v46, %v1567_v63  ;;  %v976_v41 = vmul.f32 %v1504_v50, %v1759_v45  ;;  %v1073_v58 = vmul.f32 %v1536_v42, %v1765_v51 }
  0xb0   : > { %v487_v55 = vmul.f32 %v1534_v44, %v1720_v8  ;;  %v1104_v15 = vadd.f32 %v1072_v32, %v1007_v9  ;;  %v908_v20 = vadd.f32 %v876_v29, %v811_v12  ;;  %v715_v22 = vadd.f32 %v683_v3, %v615_v14  ;;  %v1507_v32 = vld [vmem:[#allocation2 + $0x198] sm:$0xff] }
  0xb1   : > { %1233 = vst.msk [vmem:[%s1900_s23 + $0xc8] sm:$0xff] %vm216_vm0, %v1200_v7  ;;  %v780_v59 = vmul.f32 %v1535_v37, %v1746_v31  ;;  %v1170_v16 = vmul.f32 %v2129_v46, %v1568_v52  ;;  %v877_v4 = vmul.f32 %v1567_v63, %v1753_v38  ;;  %v584_v13 = vmul.f32 %v1566_v60, %v1724_v11 }
  0xb2   : > { %v519_v61 = vadd.f32 %v487_v55, %v390_v0  ;;  %v1201_v28 = vadd.f32 %v1169_v49, %v1104_v15  ;;  %v1008_v27 = vadd.f32 %v976_v41, %v908_v20  ;;  %v391_v39 = vmul.f32 %v1503_v54, %v1718_v6  ;;  %v1539_v41 = vld [vmem:[#allocation2 + $0x199] sm:$0xff] }
  0xb3   : > { %v812_v44 = vadd.f32 %v780_v59, %v715_v22  ;;  %v977_v1 = vmul.f32 %v1505_v23, %v1759_v45  ;;  %v684_v19 = vmul.f32 %v1504_v50, %v1740_v26  ;;  %v488_v25 = vmul.f32 %v1535_v37, %v1720_v8  ;;  %v1571_v59 = vld [vmem:[#allocation2 + $0x19a] sm:$0xff] }
  0xb4   : > { %v616_v10 = vadd.f32 %v584_v13, %v519_v61  ;;  %1234 = vst.msk [vmem:[%s1900_s23 + $0xd0] sm:$0xff] %vm216_vm0, %v1201_v28  ;;  %v1105_v40 = vadd.f32 %v1073_v58, %v1008_v27  ;;  %v1074_v2 = vmul.f32 %v1537_v62, %v1765_v51  ;;  %v781_v60 = vmul.f32 %v1536_v42, %v1746_v31  ;;  %v1540_v13 = vld [vmem:[#allocation2 + $0x1a1] sm:$0xff] }
  0xb5   : > { %v909_v43 = vadd.f32 %v877_v4, %v812_v44  ;;  %v520_v54 = vadd.f32 %v488_v25, %v391_v39  ;;  %v585_v34 = vmul.f32 %v1567_v63, %v1724_v11  ;;  %v685_v18 = vmul.f32 %v1505_v23, %v1740_v26 }
  0xb6   : > { %v716_v17 = vadd.f32 %v684_v19, %v616_v10  ;;  %v1202_v35 = vadd.f32 %v1170_v16, %v1105_v40  ;;  %v1171_v37 = vmul.f32 %v2129_v46, %v1569_v33  ;;  %v392_v30 = vmul.f32 %v1504_v50, %v1718_v6  ;;  %v1570_v6 = vld [vmem:[#allocation2 + $0x18a] sm:$0xff] }
  0xb7   : > { %v1009_v47 = vadd.f32 %v977_v1, %v909_v43  ;;  %v878_v24 = vmul.f32 %v1568_v52, %v1753_v38  ;;  %v617_v36 = vadd.f32 %v585_v34, %v520_v54  ;;  %v489_v53 = vmul.f32 %v1536_v42, %v1720_v8 }
  0xb8   : > { %v813_v56 = vadd.f32 %v781_v60, %v716_v17  ;;  %1235 = vst.msk [vmem:[%s1900_s23 + $0xd8] sm:$0xff] %vm216_vm0, %v1202_v35  ;;  %v978_v63 = vmul.f32 %v1506_v21, %v1759_v45  ;;  %v782_v5 = vmul.f32 %v1537_v62, %v1746_v31  ;;  %v586_v29 = vmul.f32 %v1568_v52, %v1724_v11  ;;  %v1508_v52 = vld [vmem:[#allocation2 + $0x1a0] sm:$0xff] }
  0xb9   : > { %v1106_v57 = vadd.f32 %v1074_v2, %v1009_v47  ;;  %v717_v50 = vadd.f32 %v685_v18, %v617_v36  ;;  %v521_v0 = vadd.f32 %v489_v53, %v392_v30  ;;  %v686_v7 = vmul.f32 %v1506_v21, %v1740_v26 }
  0xba   : > { %v910_v3 = vadd.f32 %v878_v24, %v813_v56  ;;  %v1075_v8 = vmul.f32 %v1538_v48, %v1765_v51  ;;  %v879_v42 = vmul.f32 %v1569_v33, %v1753_v38  ;;  %v979_v49 = vmul.f32 %v1507_v32, %v1759_v45 }
  0xbb   : > { %v1203_v9 = vadd.f32 %v1171_v37, %v1106_v57  ;;  %v814_v14 = vadd.f32 %v782_v5, %v717_v50  ;;  %v618_v58 = vadd.f32 %v586_v29, %v521_v0  ;;  %v1172_v11 = vmul.f32 %v2129_v46, %v1570_v6 }
  0xbc   : > { %v1010_v12 = vadd.f32 %v978_v63, %v910_v3  ;;  %v783_v20 = vmul.f32 %v1538_v48, %v1746_v31  ;;  %v1076_v22 = vmul.f32 %v1539_v41, %v1765_v51  ;;  %v880_v23 = vmul.f32 %v1570_v6, %v1753_v38  ;;  %v1572_v31 = vld [vmem:[#allocation2 + $0x1a2] sm:$0xff] }
  0xbd   : > { %1236 = vst.msk [vmem:[%s1900_s23 + $0xe0] sm:$0xff] %vm216_vm0, %v1203_v9  ;;  %v911_v15 = vadd.f32 %v879_v42, %v814_v14  ;;  %v718_v26 = vadd.f32 %v686_v7, %v618_v58  ;;  %v980_v61 = vmul.f32 %v1508_v52, %v1759_v45  ;;  %v1173_v27 = vmul.f32 %v2129_v46, %v1571_v59 }
  0xbe   : > { %v1107_v55 = vadd.f32 %v1075_v8, %v1010_v12  ;;  %v1077_v33 = vmul.f32 %v1540_v13, %v1765_v51  ;;  %v1174_v10 = vmul.f32 %v2129_v46, %v1572_v31 }
  0xbf   : > { %v1011_v4 = vadd.f32 %v979_v49, %v911_v15  ;;  %v815_v62 = vadd.f32 %v783_v20, %v718_v26 }
  0xc0   : > { %v1204_v16 = vadd.f32 %v1172_v11, %v1107_v55 }
  0xc1   : > { %v1108_v28 = vadd.f32 %v1076_v22, %v1011_v4  ;;  %v912_v44 = vadd.f32 %v880_v23, %v815_v62 }
  0xc2   : > { %1237 = vst.msk [vmem:[%s1900_s23 + $0xe8] sm:$0xff] %vm216_vm0, %v1204_v16 }
  0xc3   : > { %v1205_v39 = vadd.f32 %v1173_v27, %v1108_v28  ;;  %v1012_v1 = vadd.f32 %v980_v61, %v912_v44 }
  0xc5   : > { %1238 = vst.msk [vmem:[%s1900_s23 + $0xf0] sm:$0xff] %vm216_vm0, %v1205_v39  ;;  %v1109_v38 = vadd.f32 %v1077_v33, %v1012_v1 }
  0xc7   : > { %v1206_v19 = vadd.f32 %v1174_v10, %v1109_v38 }
  0xc9   : > { %1239 = vst.msk [vmem:[%s1900_s23 + $0xf8] sm:$0xff] %vm216_vm0, %v1206_v19 }
  0xca PF: > { %s12_s11 = sadd.s32 1, %s1626_s11   ;;  %s2236_s9 = smov %s1622_s10 }
  0xcb   : > { %p9_p5 = scmp.ge.s32.totalorder %s12_s11, 4   ;;  %s2237_s10 = smov %s2239_s12 }
  0xcd   :  { %11 = sbr.rel (!%p9_p5) target bundleno = 2 (0x2), region = 70 }

</bundles_post_ra>
